<compile_context>
chip_gen: v5e
topology: v5e:2x2
jax: 0.10.0
libtpu: 0.0.40
codegen_flags: <defaults>
</compile_context>

<pallas_src>
import functools

import jax
import jax.numpy as jnp
from jax.experimental import pallas as pl
from jax.experimental.pallas import tpu as pltpu

LN_EPS = 1e-5


# ---------------------------------------------------------------------------
# Kernel
# ---------------------------------------------------------------------------

def _layernorm(h, gamma, beta):
    # PyTorch LayerNorm: biased variance over last dim; stats in f32.
    mu = jnp.mean(h, axis=-1, keepdims=True)
    var = jnp.mean(jnp.square(h - mu), axis=-1, keepdims=True)
    # Fold gamma into the rsqrt scale (rsqrt lowers to the EUP slot).
    return (h - mu) * (jax.lax.rsqrt(var + LN_EPS) * gamma) + beta


def residual_block_kernel(x_ref, w1_ref, ws_ref, w2_ref, c_ref, o_ref):
    """One batch tile of ResidualBlock.

    x_ref : (block_b, in_dim)   matmul dtype (f32 or bf16, cast in wrapper)
    w1_ref: (in_dim, out_dim)   matmul dtype   first Linear weight (pre-transposed)
    ws_ref: (in_dim, out_dim)   matmul dtype   shortcut Linear weight
    w2_ref: (out_dim, out_dim)  matmul dtype   second Linear weight
    c_ref : (7, out_dim)        f32  rows = [b1, bs, g1, be1, b2, g2, be2]
    o_ref : (block_b, out_dim)  out dtype
    """
    # Hoist the stacked constants once (JAX does not CSE broadcast_in_dim).
    c = c_ref[...]
    b1, bs = c[0:1, :], c[1:2, :]
    g1, be1 = c[2:3, :], c[3:4, :]
    b2, g2, be2 = c[4:5, :], c[5:6, :], c[6:7, :]

    x = x_ref[...]                      # already in matmul dtype
    md = x.dtype

    # Two separate MXU pushes on the same VMEM-resident x tile (no mid-vreg
    # lane-64 split); accumulation in f32.
    h = jnp.dot(x, w1_ref[...], preferred_element_type=jnp.float32) + b1
    sc = jnp.dot(x, ws_ref[...], preferred_element_type=jnp.float32) + bs

    # LayerNorm -> ReLU (all f32 elementwise).
    h = _layernorm(h, g1, be1)
    h = jnp.maximum(h, 0.0)

    # Linear(out_dim, out_dim) -> LayerNorm.
    h = jnp.dot(h.astype(md), w2_ref[...], preferred_element_type=jnp.float32) + b2
    h = _layernorm(h, g2, be2)

    o_ref[...] = (h + sc).astype(o_ref.dtype)


# ---------------------------------------------------------------------------
# Tiling / chip heuristics
# ---------------------------------------------------------------------------

def _round_up(n, m):
    return ((n + m - 1) // m) * m


def _chip_info():
    """Best-effort TPU generation query (never raises)."""
    try:
        kind = jax.devices()[0].device_kind.lower()
    except Exception:  # pragma: no cover - defensive
        kind = ""
    # Parts where a single program sees 2 TensorCores (megacore / dual-TC).
    num_cores = 2 if any(t in kind for t in ("v4", "v5p", "7")) else 1
    # bf16 MXU inputs are the throughput path on v6e / v7x.
    prefer_bf16 = any(t in kind for t in ("v6", "6e", "7"))
    return dict(num_cores=num_cores, prefer_bf16=prefer_bf16)


def _choose_block_b(B, in_dim, out_dim, *, num_cores, x_bytes, out_bytes,
                    max_rows=4096, vmem_budget_bytes=24 << 20):
    """Pick (block_b, padded_B).

    block_b is sublane-aligned (multiple of 8), capped by max_rows and an explicit
    per-step VMEM byte budget (double-buffered x/out tiles + f32 intermediates), so
    the choice is portable to v7x's smaller VMEM.  On 2-TensorCore parts we prefer
    >= 2 grid steps (so both cores get work); on 1-TC parts the grid stays as short
    as possible (a grid is a serial loop there).
    """
    # Per-row VMEM estimate: 2x double-buffered x + 2x double-buffered out +
    # ~4 f32 intermediates of width out_dim (h, sc, scratch).
    per_row = 2 * in_dim * x_bytes + 2 * out_dim * out_bytes + 4 * out_dim * 4
    cap = max(8, min(max_rows, (vmem_budget_bytes // per_row) // 8 * 8))

    B8 = _round_up(B, 8)
    if B8 <= cap:
        bb = B8
    else:
        divs = [d for d in range(8, cap + 1, 8) if B8 % d == 0]
        bb = max(divs) if divs else cap

    # 2-TC parts: split a single-step grid so both cores get work (>=64 rows/tile).
    if num_cores >= 2 and _round_up(B8, bb) // bb < 2 and bb >= 128 and (bb // 2) % 8 == 0:
        bb = bb // 2

    padded_B = _round_up(B8, bb)
    return bb, padded_B


# ---------------------------------------------------------------------------
# pallas_call wrapper
# ---------------------------------------------------------------------------

@functools.partial(
    jax.jit,
    static_argnames=("block_b", "padded_B", "matmul_dtype", "out_dtype"))
def _residual_block_call(x, w1, ws, w2, consts, *,
                         block_b, padded_B, matmul_dtype, out_dtype):
    B, in_dim = x.shape
    out_dim = w1.shape[1]

    # Cast to the MXU input dtype in the wrapper (HBM traffic already halved for
    # bf16); pad the batch so every tile is full and sublane-aligned.
    xm = x.astype(matmul_dtype)
    if padded_B != B:
        xm = jnp.pad(xm, ((0, padded_B - B), (0, 0)))
    w1m = w1.astype(matmul_dtype)
    wsm = ws.astype(matmul_dtype)
    w2m = w2.astype(matmul_dtype)

    grid = (padded_B // block_b,)
    const2d = lambda shape: pl.BlockSpec(shape, lambda i: (0, 0))

    mm_bytes = jnp.dtype(matmul_dtype).itemsize
    out_bytes = jnp.dtype(out_dtype).itemsize
    bytes_accessed = (
        padded_B * in_dim * mm_bytes                 # x
        + padded_B * out_dim * out_bytes             # output
        + (2 * in_dim * out_dim + out_dim * out_dim) * mm_bytes  # weights
        + 7 * out_dim * 4)                           # stacked constants
    cost = pl.CostEstimate(
        flops=2 * padded_B * (2 * in_dim * out_dim + out_dim * out_dim),
        transcendentals=2 * padded_B,                # two rsqrt per row
        bytes_accessed=int(bytes_accessed))

    out = pl.pallas_call(
        residual_block_kernel,
        out_shape=jax.ShapeDtypeStruct((padded_B, out_dim), out_dtype),
        grid_spec=pltpu.PrefetchScalarGridSpec(
            num_scalar_prefetch=0,
            grid=grid,
            in_specs=[
                pl.BlockSpec((block_b, in_dim), lambda i: (i, 0)),  # x tile
                const2d((in_dim, out_dim)),    # w1
                const2d((in_dim, out_dim)),    # w_shortcut
                const2d((out_dim, out_dim)),   # w2
                const2d((7, out_dim)),         # [b1; bs; g1; be1; b2; g2; be2]
            ],
            out_specs=pl.BlockSpec((block_b, out_dim), lambda i: (i, 0)),
        ),
        compiler_params=pltpu.CompilerParams(
            dimension_semantics=("parallel",)),
        cost_estimate=cost,
    )(xm, w1m, wsm, w2m, consts)

    return out[:B] if padded_B != B else out


def residual_block(x, params, *, block_b=None, matmul_dtype=None, out_dtype=None):
    """x: (B, in_dim). params: dict of kernel-layout parameters (weights are (in, out))."""
    B, in_dim = x.shape
    out_dim = params["w1"].shape[1]

    info = _chip_info()
    if matmul_dtype is None:
        # bf16 MXU inputs by default on v6e/v7x; f32 elsewhere. LN/ReLU stay f32.
        matmul_dtype = jnp.bfloat16 if info["prefer_bf16"] else jnp.float32
    if out_dtype is None:
        out_dtype = x.dtype

    if block_b is None:
        block_b, padded_B = _choose_block_b(
            B, in_dim, out_dim,
            num_cores=info["num_cores"],
            x_bytes=jnp.dtype(matmul_dtype).itemsize,
            out_bytes=jnp.dtype(out_dtype).itemsize)
    else:
        assert block_b % 8 == 0, "block_b must be sublane-aligned (multiple of 8)"
        padded_B = _round_up(B, block_b)

    # Stack the seven per-feature constants into one (7, out_dim) f32 operand.
    consts = jnp.concatenate(
        [params["b1"], params["bs"], params["g1"], params["be1"],
         params["b2"], params["g2"], params["be2"]], axis=0).astype(jnp.float32)

    return _residual_block_call(
        x, params["w1"], params["ws"], params["w2"], consts,
        block_b=block_b, padded_B=padded_B,
        matmul_dtype=matmul_dtype, out_dtype=out_dtype)


# ---------------------------------------------------------------------------
# Params / reference / demo
# ---------------------------------------------------------------------------

def init_params(key, in_dim, out_dim):
    """Deterministic synthetic params (kernel layout: weights are (in, out))."""
    ks = jax.random.split(key, 3)

    def lin(k, fi, fo):   # PyTorch Linear default init scale (+/- 1/sqrt(fan_in)).
        kw, kb = jax.random.split(k)
        bound = 1.0 / (fi ** 0.5)
        w = jax.random.uniform(kw, (fi, fo), jnp.float32, -bound, bound)
        b = jax.random.uniform(kb, (1, fo), jnp.float32, -bound, bound)
        return w, b

    w1, b1 = lin(ks[0], in_dim, out_dim)
    w2, b2 = lin(ks[1], out_dim, out_dim)
    ws, bs = lin(ks[2], in_dim, out_dim)   # shortcut Linear (in_dim != out_dim)
    return dict(
        w1=w1, b1=b1,
        g1=jnp.ones((1, out_dim), jnp.float32), be1=jnp.zeros((1, out_dim), jnp.float32),
        w2=w2, b2=b2,
        g2=jnp.ones((1, out_dim), jnp.float32), be2=jnp.zeros((1, out_dim), jnp.float32),
        ws=ws, bs=bs,
    )


def reference(x, p):
    """Pure-JAX reference of the PyTorch forward."""
    def ln(h, g, b):
        mu = jnp.mean(h, -1, keepdims=True)
        var = jnp.mean((h - mu) ** 2, -1, keepdims=True)
        return (h - mu) / jnp.sqrt(var + LN_EPS) * g + b

    h = x @ p["w1"] + p["b1"]
    h = ln(h, p["g1"], p["be1"])
    h = jnp.maximum(h, 0.0)
    h = h @ p["w2"] + p["b2"]
    h = ln(h, p["g2"], p["be2"])
    return h + (x @ p["ws"] + p["bs"])


if __name__ == "__main__":
    in_dim, out_dim = 32, 64
    batch = 128

    key = jax.random.PRNGKey(0)
    kx, kp = jax.random.split(key)
    x = jax.random.normal(kx, (batch, in_dim), jnp.float32)
    params = init_params(kp, in_dim, out_dim)

    ref = reference(x, params)

    # f32 path — tight check vs. reference.
    out = jax.block_until_ready(
        residual_block(x, params, matmul_dtype=jnp.float32, out_dtype=jnp.float32))
    assert out.shape == (batch, out_dim)
    assert jnp.allclose(out, ref, atol=1e-4, rtol=1e-4), "f32 mismatch vs reference"

    # bf16 MXU-input + bf16-output path (halves HBM traffic; f32 accumulation/LN/ReLU).
    out_bf16 = jax.block_until_ready(
        residual_block(x, params, matmul_dtype=jnp.bfloat16, out_dtype=jnp.bfloat16))
    assert out_bf16.shape == (batch, out_dim)
    assert jnp.allclose(out_bf16.astype(jnp.float32), ref, atol=1e-1, rtol=1e-1), \
        "bf16 mismatch vs reference"

    # Ragged batch (exercises the wrapper-side padding path instead of a full-B tile).
    x_odd = jax.random.normal(kx, (50, in_dim), jnp.float32)
    out_odd = jax.block_until_ready(
        residual_block(x_odd, params, matmul_dtype=jnp.float32, out_dtype=jnp.float32))
    assert out_odd.shape == (50, out_dim)
    assert jnp.allclose(out_odd, reference(x_odd, params), atol=1e-4, rtol=1e-4), \
        "padded-batch mismatch vs reference"

    print("KERNEL_OK")
</pallas_src>

<mosaic_0001>
module attributes {stable_mosaic.version = 11 : i64} {
  func.func @residual_block_kernel(%arg0: i32, %arg1: memref<128x32xf32, #tpu.memory_space<vmem>>, %arg2: memref<32x64xf32, #tpu.memory_space<vmem>>, %arg3: memref<32x64xf32, #tpu.memory_space<vmem>>, %arg4: memref<64x64xf32, #tpu.memory_space<vmem>>, %arg5: memref<7x64xf32, #tpu.memory_space<vmem>>, %arg6: memref<128x64xf32, #tpu.memory_space<vmem>>) attributes {dimension_semantics = [#tpu.dimension_semantics<parallel>], iteration_bounds = array<i64: 1>, scalar_prefetch = 0 : i64, scratch_operands = 0 : i64, tpu.core_type = #tpu.core_type<tc>, window_params = [{transform_indices = @transform_0, window_bounds = array<i64: 128, 32>}, {pipeline_mode = #tpu.pipeline_mode<synchronous>, transform_indices = @transform_1, window_bounds = array<i64: 32, 64>}, {pipeline_mode = #tpu.pipeline_mode<synchronous>, transform_indices = @transform_2, window_bounds = array<i64: 32, 64>}, {pipeline_mode = #tpu.pipeline_mode<synchronous>, transform_indices = @transform_3, window_bounds = array<i64: 64, 64>}, {pipeline_mode = #tpu.pipeline_mode<synchronous>, transform_indices = @transform_4, window_bounds = array<i64: 7, 64>}, {transform_indices = @transform_5, window_bounds = array<i64: 128, 64>}]} {
    %c0 = arith.constant 0 : index
    %c0_0 = arith.constant 0 : index
    %0 = vector.load %arg5[%c0, %c0_0] : memref<7x64xf32, #tpu.memory_space<vmem>>, vector<7x64xf32>
    %1 = vector.extract_strided_slice %0 {offsets = [0, 0], sizes = [1, 64], strides = [1, 1]} : vector<7x64xf32> to vector<1x64xf32>
    %2 = vector.extract_strided_slice %0 {offsets = [1, 0], sizes = [1, 64], strides = [1, 1]} : vector<7x64xf32> to vector<1x64xf32>
    %3 = vector.extract_strided_slice %0 {offsets = [2, 0], sizes = [1, 64], strides = [1, 1]} : vector<7x64xf32> to vector<1x64xf32>
    %4 = vector.extract_strided_slice %0 {offsets = [3, 0], sizes = [1, 64], strides = [1, 1]} : vector<7x64xf32> to vector<1x64xf32>
    %5 = vector.extract_strided_slice %0 {offsets = [4, 0], sizes = [1, 64], strides = [1, 1]} : vector<7x64xf32> to vector<1x64xf32>
    %6 = vector.extract_strided_slice %0 {offsets = [5, 0], sizes = [1, 64], strides = [1, 1]} : vector<7x64xf32> to vector<1x64xf32>
    %7 = vector.extract_strided_slice %0 {offsets = [6, 0], sizes = [1, 64], strides = [1, 1]} : vector<7x64xf32> to vector<1x64xf32>
    %c0_1 = arith.constant 0 : index
    %c0_2 = arith.constant 0 : index
    %8 = vector.load %arg1[%c0_1, %c0_2] : memref<128x32xf32, #tpu.memory_space<vmem>>, vector<128x32xf32>
    %c0_3 = arith.constant 0 : index
    %c0_4 = arith.constant 0 : index
    %9 = vector.load %arg2[%c0_3, %c0_4] : memref<32x64xf32, #tpu.memory_space<vmem>>, vector<32x64xf32>
    %cst = arith.constant dense<0.000000e+00> : vector<128x64xf32>
    %10 = tpu.matmul %8, %9, %cst {dimension_numbers = #tpu.dot_dimension_numbers<[1], [0], [0], [1], [0, 0, 1, 1], [], []>} : vector<128x32xf32>, vector<32x64xf32>, vector<128x64xf32> -> vector<128x64xf32>
    %11 = vector.broadcast %1 : vector<1x64xf32> to vector<128x64xf32>
    %12 = arith.addf %10, %11 : vector<128x64xf32>
    %c0_5 = arith.constant 0 : index
    %c0_6 = arith.constant 0 : index
    %13 = vector.load %arg3[%c0_5, %c0_6] : memref<32x64xf32, #tpu.memory_space<vmem>>, vector<32x64xf32>
    %cst_7 = arith.constant dense<0.000000e+00> : vector<128x64xf32>
    %14 = tpu.matmul %8, %13, %cst_7 {dimension_numbers = #tpu.dot_dimension_numbers<[1], [0], [0], [1], [0, 0, 1, 1], [], []>} : vector<128x32xf32>, vector<32x64xf32>, vector<128x64xf32> -> vector<128x64xf32>
    %15 = vector.broadcast %2 : vector<1x64xf32> to vector<128x64xf32>
    %16 = arith.addf %14, %15 : vector<128x64xf32>
    %cst_8 = arith.constant dense<0.000000e+00> : vector<128xf32>
    %17 = vector.multi_reduction <add>, %12, %cst_8 [1] : vector<128x64xf32> to vector<128xf32>
    %18 = vector.shape_cast %17 : vector<128xf32> to vector<128x1xf32>
    %cst_9 = arith.constant 6.400000e+01 : f32
    %19 = vector.broadcast %cst_9 : f32 to vector<128x1xf32>
    %20 = arith.divf %18, %19 : vector<128x1xf32>
    %21 = vector.broadcast %20 : vector<128x1xf32> to vector<128x64xf32>
    %22 = arith.subf %12, %21 : vector<128x64xf32>
    %23 = arith.mulf %22, %22 : vector<128x64xf32>
    %cst_10 = arith.constant dense<0.000000e+00> : vector<128xf32>
    %24 = vector.multi_reduction <add>, %23, %cst_10 [1] : vector<128x64xf32> to vector<128xf32>
    %25 = vector.shape_cast %24 : vector<128xf32> to vector<128x1xf32>
    %cst_11 = arith.constant 6.400000e+01 : f32
    %26 = vector.broadcast %cst_11 : f32 to vector<128x1xf32>
    %27 = arith.divf %25, %26 : vector<128x1xf32>
    %28 = vector.broadcast %20 : vector<128x1xf32> to vector<128x64xf32>
    %29 = arith.subf %12, %28 : vector<128x64xf32>
    %cst_12 = arith.constant 9.99999974E-6 : f32
    %30 = vector.broadcast %cst_12 : f32 to vector<128x1xf32>
    %31 = arith.addf %27, %30 : vector<128x1xf32>
    %32 = math.rsqrt %31 : vector<128x1xf32>
    %33 = vector.broadcast %32 : vector<128x1xf32> to vector<128x64xf32>
    %34 = vector.broadcast %3 : vector<1x64xf32> to vector<128x64xf32>
    %35 = arith.mulf %33, %34 : vector<128x64xf32>
    %36 = arith.mulf %29, %35 : vector<128x64xf32>
    %37 = vector.broadcast %4 : vector<1x64xf32> to vector<128x64xf32>
    %38 = arith.addf %36, %37 : vector<128x64xf32>
    %cst_13 = arith.constant 0.000000e+00 : f32
    %39 = vector.broadcast %cst_13 : f32 to vector<128x64xf32>
    %40 = arith.maximumf %38, %39 : vector<128x64xf32>
    %c0_14 = arith.constant 0 : index
    %c0_15 = arith.constant 0 : index
    %41 = vector.load %arg4[%c0_14, %c0_15] : memref<64x64xf32, #tpu.memory_space<vmem>>, vector<64x64xf32>
    %cst_16 = arith.constant dense<0.000000e+00> : vector<128x64xf32>
    %42 = tpu.matmul %40, %41, %cst_16 {dimension_numbers = #tpu.dot_dimension_numbers<[1], [0], [0], [1], [0, 0, 1, 1], [], []>} : vector<128x64xf32>, vector<64x64xf32>, vector<128x64xf32> -> vector<128x64xf32>
    %43 = vector.broadcast %5 : vector<1x64xf32> to vector<128x64xf32>
    %44 = arith.addf %42, %43 : vector<128x64xf32>
    %cst_17 = arith.constant dense<0.000000e+00> : vector<128xf32>
    %45 = vector.multi_reduction <add>, %44, %cst_17 [1] : vector<128x64xf32> to vector<128xf32>
    %46 = vector.shape_cast %45 : vector<128xf32> to vector<128x1xf32>
    %cst_18 = arith.constant 6.400000e+01 : f32
    %47 = vector.broadcast %cst_18 : f32 to vector<128x1xf32>
    %48 = arith.divf %46, %47 : vector<128x1xf32>
    %49 = vector.broadcast %48 : vector<128x1xf32> to vector<128x64xf32>
    %50 = arith.subf %44, %49 : vector<128x64xf32>
    %51 = arith.mulf %50, %50 : vector<128x64xf32>
    %cst_19 = arith.constant dense<0.000000e+00> : vector<128xf32>
    %52 = vector.multi_reduction <add>, %51, %cst_19 [1] : vector<128x64xf32> to vector<128xf32>
    %53 = vector.shape_cast %52 : vector<128xf32> to vector<128x1xf32>
    %cst_20 = arith.constant 6.400000e+01 : f32
    %54 = vector.broadcast %cst_20 : f32 to vector<128x1xf32>
    %55 = arith.divf %53, %54 : vector<128x1xf32>
    %56 = vector.broadcast %48 : vector<128x1xf32> to vector<128x64xf32>
    %57 = arith.subf %44, %56 : vector<128x64xf32>
    %cst_21 = arith.constant 9.99999974E-6 : f32
    %58 = vector.broadcast %cst_21 : f32 to vector<128x1xf32>
    %59 = arith.addf %55, %58 : vector<128x1xf32>
    %60 = math.rsqrt %59 : vector<128x1xf32>
    %61 = vector.broadcast %60 : vector<128x1xf32> to vector<128x64xf32>
    %62 = vector.broadcast %6 : vector<1x64xf32> to vector<128x64xf32>
    %63 = arith.mulf %61, %62 : vector<128x64xf32>
    %64 = arith.mulf %57, %63 : vector<128x64xf32>
    %65 = vector.broadcast %7 : vector<1x64xf32> to vector<128x64xf32>
    %66 = arith.addf %64, %65 : vector<128x64xf32>
    %67 = arith.addf %66, %16 : vector<128x64xf32>
    %c0_22 = arith.constant 0 : index
    %c0_23 = arith.constant 0 : index
    %68 = vector.load %arg6[%c0_22, %c0_23] : memref<128x64xf32, #tpu.memory_space<vmem>>, vector<128x64xf32>
    tpu.vector_store %arg6[%c0_22, %c0_23], %67 {strides = array<i32>} : memref<128x64xf32, #tpu.memory_space<vmem>>, vector<128x64xf32>,
    return
  }
  func.func @transform_0(%arg0: i32) -> (i32, i32) {
    %c0_i32 = arith.constant 0 : i32
    %c0_i32_0 = arith.constant 0 : i32
    return %arg0, %c0_i32 : i32, i32
  }
  func.func @transform_1(%arg0: i32) -> (i32, i32) {
    %c0_i32 = arith.constant 0 : i32
    %c0_i32_0 = arith.constant 0 : i32
    %c0_i32_1 = arith.constant 0 : i32
    return %c0_i32, %c0_i32_0 : i32, i32
  }
  func.func @transform_2(%arg0: i32) -> (i32, i32) {
    %c0_i32 = arith.constant 0 : i32
    %c0_i32_0 = arith.constant 0 : i32
    %c0_i32_1 = arith.constant 0 : i32
    return %c0_i32, %c0_i32_0 : i32, i32
  }
  func.func @transform_3(%arg0: i32) -> (i32, i32) {
    %c0_i32 = arith.constant 0 : i32
    %c0_i32_0 = arith.constant 0 : i32
    %c0_i32_1 = arith.constant 0 : i32
    return %c0_i32, %c0_i32_0 : i32, i32
  }
  func.func @transform_4(%arg0: i32) -> (i32, i32) {
    %c0_i32 = arith.constant 0 : i32
    %c0_i32_0 = arith.constant 0 : i32
    %c0_i32_1 = arith.constant 0 : i32
    return %c0_i32, %c0_i32_0 : i32, i32
  }
  func.func @transform_5(%arg0: i32) -> (i32, i32) {
    %c0_i32 = arith.constant 0 : i32
    %c0_i32_0 = arith.constant 0 : i32
    return %arg0, %c0_i32 : i32, i32
  }
}

</mosaic_0001>

<bundles_post_ra>
// kernel: _residual_block_call.1
= control target key start
LH: loop header
LB: loop body
LE: loop exit
PB: predicated region body
PF: predicated region fallthrough
CT: control target
= control target key end

     0   :  { %vm42_vm0 = vcmask 261120   ;;  %vm226_vm1 = vcmask 523264   ;;  %v1317_v44 = vmov 64.0   ;;  %s2375_s1 = inlined_call_operand.vmem [shape: f32[32,64], index: 1, kind: input, shape index: {}]   ;;  %s2376_s0 = inlined_call_operand.vmem [shape: f32[128,32], index: 0, kind: input, shape index: {}]   ;;  %s2377_s4 = inlined_call_operand.vmem [shape: f32[7,64], index: 4, kind: input, shape index: {}]   ;;  %s2378_s3 = inlined_call_operand.vmem [shape: f32[64,64], index: 3, kind: input, shape index: {}]   ;;  %s2379_s2 = inlined_call_operand.vmem [shape: f32[32,64], index: 2, kind: input, shape index: {}]   ;;  %s2380_s5 = inlined_call_operand.vmem [shape: f32[128,64], index: 5, kind: output, shape index: {}]  }
   0x1   :  { %v40_v0 = vld [vmem:[%s2375_s1 + $0x18] sm:$0xff]  ;;  %v39_v1 = vld [vmem:[%s2375_s1 + $0x10] sm:$0xff]  ;;  %v38_v2 = vld [vmem:[%s2375_s1 + $0x8] sm:$0xff]  ;;  %1245 = vrcp.f32 %v1317_v44 }
   0x2   :  { %103 = vmatpush.msra.mxu0 %v40_v0  ;;  %1228 = vmatpush.msra.mxu3 %v40_v0  ;;  %v37_v3 = vld [vmem:[%s2375_s1] sm:$0xff]  ;;  %v1370_v5 = vld [vmem:[%s2376_s0 + $0x8] sm:$0xff]  ;;  %v1377_v6 = vld [vmem:[%s2376_s0 + $0x10] sm:$0xff] }
   0x3   :  { %v1363_v4 = vld [vmem:[%s2376_s0] sm:$0xff]  ;;  %v1384_v7 = vld [vmem:[%s2376_s0 + $0x18] sm:$0xff]  ;;  %v1398_v9 = vld [vmem:[%s2376_s0 + $0x28] sm:$0xff] }
   0x4   :  { %104 = vmatpush.msra.mxu0 %v39_v1  ;;  %1229 = vmatpush.msra.mxu3 %v39_v1  ;;  %v1391_v8 = vld [vmem:[%s2376_s0 + $0x20] sm:$0xff]  ;;  %v1405_v10 = vld [vmem:[%s2376_s0 + $0x30] sm:$0xff]  ;;  %v1412_v11 = vld [vmem:[%s2376_s0 + $0x38] sm:$0xff] }
   0x5   :  { %v29_v12 = vld [vmem:[%s2376_s0 + $0x40] sm:$0xff]  ;;  %v30_v13 = vld [vmem:[%s2376_s0 + $0x48] sm:$0xff]  ;;  %v31_v14 = vld [vmem:[%s2376_s0 + $0x50] sm:$0xff] }
   0x6   :  { %105 = vmatpush.msra.mxu0 %v38_v2  ;;  %1230 = vmatpush.msra.mxu3 %v38_v2  ;;  %v32_v15 = vld [vmem:[%s2376_s0 + $0x58] sm:$0xff]  ;;  %v33_v16 = vld [vmem:[%s2376_s0 + $0x60] sm:$0xff]  ;;  %v1439_v17 = vld [vmem:[%s2376_s0 + $0x68] sm:$0xff] }
   0x7   :  { %v1446_v18 = vld [vmem:[%s2376_s0 + $0x70] sm:$0xff]  ;;  %v1453_v19 = vld [vmem:[%s2377_s4] sm:$0x7f]  ;;  %v1461_v21 = vld [vmem:[%s2376_s0 + $0x78] sm:$0xff]  ;;  %v1246_v46 = vpop.eup %1245 }
   0x8   :  { %106 = vmatpush.msra.mxu0 %v37_v3  ;;  %1231 = vmatpush.msra.mxu3 %v37_v3  ;;  %v1456_v20 = vperm.slane %v1453_v19, 0  ;;  %v276_v47 = vmul.f32 64.0, %v1246_v46  ;;  %vm280_vm2 = vweird.f32 %v1246_v46 }
   0x9   :  { %1180 = vmatmul.msk.f32.vlgmr.msra.gmra.mxu0 %vm42_vm0, %v1363_v4  ;;  %1193 = vmatmul.msk.f32.vlgmr.msra.gmra.mxu3 %vm42_vm0, %v1439_v17 }
   0xa   :  { %v277_v49 = vsub.f32 1.0, %v276_v47 }
   0xc   :  { %v278_v50 = vmul.f32 %v1246_v46, %v277_v49 }
   0xe   :  { %v279_v51 = vadd.f32 %v1246_v46, %v278_v50 }
  0x10   :  { %v1488_v53 = vsel %vm280_vm2, %v1246_v46, %v279_v51 }
  0x11   :  { %1181 = vmatmul.msk.f32.gmra.mxu0 %vm42_vm0, %v1370_v5  ;;  %1194 = vmatmul.msk.f32.gmra.mxu3 %vm42_vm0, %v1446_v18 }
  0x19   :  { %1182 = vmatmul.msk.f32.gmra.mxu0 %vm42_vm0, %v1377_v6  ;;  %1195 = vmatmul.msk.f32.gmra.mxu3 %vm42_vm0, %v1461_v21 }
  0x21   :  { %1183 = vmatmul.msk.f32.gmra.mxu0 %vm42_vm0, %v1384_v7 }
  0x29   :  { %1184 = vmatmul.msk.f32.gmra.mxu0 %vm42_vm0, %v1391_v8 }
  0x31   :  { %1185 = vmatmul.msk.f32.gmra.mxu0 %vm42_vm0, %v1398_v9 }
  0x39   :  { %1186 = vmatmul.msk.f32.gmra.mxu0 %vm42_vm0, %v1405_v10 }
  0x41   :  { %1187 = vmatmul.msk.f32.gmra.mxu0 %vm42_vm0, %v1412_v11 }
  0x49   :  { %1188 = vmatmul.msk.f32.gmra.mxu0 %vm42_vm0, %v29_v12 }
  0x51   :  { %1189 = vmatmul.msk.f32.gmra.mxu0 %vm42_vm0, %v30_v13 }
  0x59   :  { %1190 = vmatmul.msk.f32.gmra.mxu0 %vm42_vm0, %v31_v14 }
  0x61   :  { %1191 = vmatmul.msk.f32.gmra.mxu0 %vm42_vm0, %v32_v15 }
  0x69   :  { %1192 = vmatmul.msk.f32.gmra.mxu0 %vm42_vm0, %v33_v16 }
  0x86   :  { %v108_v22 = vpop.f32.mrf.mxu0 }
  0x87   :  { %v109_v23 = vadd.f32 %v108_v22, %v1456_v20 }
  0x89   :  { %v227_v24 = vsel %vm226_vm1, %v109_v23, 0.0 }
  0x8a   :  { %228 = vadd.xlane.f32.xlu0 %v227_v24 }
  0x8c   :  { %v147_v15 = vpop.f32.mrf.mxu3 }
  0x8e   :  { %v111_v25 = vpop.f32.mrf.mxu0 }
  0x8f   :  { %v112_v26 = vadd.f32 %v111_v25, %v1456_v20 }
  0x91   :  { %v230_v27 = vsel %vm226_vm1, %v112_v26, 0.0 }
  0x92   :  { %231 = vadd.xlane.f32.xlu0 %v230_v27 }
  0x96   :  { %v114_v28 = vpop.f32.mrf.mxu0 }
  0x97   :  { %v115_v29 = vadd.f32 %v114_v28, %v1456_v20 }
  0x99   :  { %v233_v30 = vsel %vm226_vm1, %v115_v29, 0.0 }
  0x9a   :  { %234 = vadd.xlane.f32.xlu1 %v233_v30 }
  0x9e   :  { %v117_v31 = vpop.f32.mrf.mxu0 }
  0x9f   :  { %v118_v32 = vadd.f32 %v117_v31, %v1456_v20 }
  0xa1   :  { %v236_v33 = vsel %vm226_vm1, %v118_v32, 0.0 }
  0xa2   :  { %237 = vadd.xlane.f32.xlu1 %v236_v33  ;;  %v150_v33 = vpop.f32.mrf.mxu3 }
  0xa6   :  { %v120_v34 = vpop.f32.mrf.mxu0 }
  0xa7   :  { %v1474_v35 = vadd.f32 %v120_v34, %v1456_v20 }
  0xa9   :  { %v239_v36 = vsel %vm226_vm1, %v1474_v35, 0.0 }
  0xaa   :  { %240 = vadd.xlane.f32.xlu2 %v239_v36  ;;  %v153_v47 = vpop.f32.mrf.mxu3 }
  0xab   :  { %v1558_v51 = vadd.f32 %v153_v47, %v1456_v20 }
  0xae   :  { %v123_v37 = vpop.f32.mrf.mxu0 }
  0xaf   :  { %v1479_v38 = vadd.f32 %v123_v37, %v1456_v20 }
  0xb1   :  { %v242_v39 = vsel %vm226_vm1, %v1479_v38, 0.0 }
  0xb2   :  { %243 = vadd.xlane.f32.xlu2 %v242_v39 }
  0xb6   :  { %v126_v40 = vpop.f32.mrf.mxu0 }
  0xb7   :  { %v1484_v41 = vadd.f32 %v126_v40, %v1456_v20 }
  0xb9   :  { %v245_v42 = vsel %vm226_vm1, %v1484_v41, 0.0 }
  0xba   :  { %246 = vadd.xlane.f32.xlu1 %v245_v42  ;;  %v1541_v42 = vadd.f32 %v150_v33, %v1456_v20 }
  0xbc   :  { %v269_v46 = vsel %vm226_vm1, %v1541_v42, 0.0 }
  0xbe   :  { %v129_v43 = vpop.f32.mrf.mxu0 }
  0xbf   :  { %v1498_v62 = vadd.f32 %v129_v43, %v1456_v20 }
  0xc1   :  { %v248_v2 = vsel %vm226_vm1, %v1498_v62, 0.0 }
  0xc6   :  { %v132_v45 = vpop.f32.mrf.mxu0 }
  0xc7   :  { %v1514_v22 = vadd.f32 %v132_v45, %v1456_v20 }
  0xc9   :  { %v251_v27 = vsel %vm226_vm1, %v1514_v22, 0.0 }
  0xce   :  { %v135_v48 = vpop.f32.mrf.mxu0 }
  0xcf   :  { %v1530_v31 = vadd.f32 %v135_v48, %v1456_v20 }
  0xd1   :  { %v254_v40 = vsel %vm226_vm1, %v1530_v31, 0.0 }
  0xd6   :  { %v138_v52 = vpop.f32.mrf.mxu0 }
  0xd7   :  { %v1547_v44 = vadd.f32 %v138_v52, %v1456_v20 }
  0xd9   :  { %v257_v50 = vsel %vm226_vm1, %v1547_v44, 0.0 }
  0xde   :  { %v141_v57 = vpop.f32.mrf.mxu0 }
  0xe6   :  { %v144_v1 = vpop.f32.mrf.mxu0 }
  0xe7   :  { %v1509_v14 = vadd.f32 %v144_v1, %v1456_v20  ;;  %v1583_v1 = vld [vmem:[%s2378_s3 + $0x38] sm:$0xff] }
  0xe8   :  { %701 = vmatpush.msra.mxu2 %v1583_v1 }
  0xe9   :  { %v263_v24 = vsel %vm226_vm1, %v1509_v14, 0.0 }
  0xfd   :  { %v229_v54 = vpop.xlane.xlu0 %228 }
  0xfe   :  { %v282_v55 = vmul.f32 %v1488_v53, %v229_v54  ;;  %v1564_v54 = vadd.f32 %v141_v57, %v1456_v20 }
 0x100   :  { %v1491_v56 = vsub.f32 %v109_v23, %v282_v55 }
 0x102   :  { %v314_v58 = vmul.f32 %v1491_v56, %v1491_v56 }
 0x104   :  { %v330_v59 = vsel %vm226_vm1, %v314_v58, 0.0  ;;  %v272_v58 = vsel %vm226_vm1, %v1558_v51, 0.0 }
 0x105   :  { %331 = vadd.xlane.f32.xlu0 %v330_v59  ;;  %v232_v60 = vpop.xlane.xlu0 %231 }
 0x106   :  { %v283_v61 = vmul.f32 %v1488_v53, %v232_v60 }
 0x108   :  { %v1500_v63 = vsub.f32 %v112_v26, %v283_v61  ;;  %v260_v61 = vsel %vm226_vm1, %v1564_v54, 0.0 }
 0x10a   :  { %v315_v0 = vmul.f32 %v1500_v63, %v1500_v63 }
 0x10c   :  { %v333_v3 = vsel %vm226_vm1, %v315_v0, 0.0 }
 0x10d   :  { %v235_v12 = vpop.xlane.xlu1 %234  ;;  %249 = vadd.xlane.f32.xlu0 %v248_v2  ;;  %334 = vadd.xlane.f32.xlu2 %v333_v3  ;;  %v1589_v2 = vld [vmem:[%s2378_s3 + $0x30] sm:$0xff]  ;;  %v1601_v3 = vld [vmem:[%s2378_s3 + $0x20] sm:$0xff] }
 0x10e   :  { %v284_v13 = vmul.f32 %v1488_v53, %v235_v12  ;;  %702 = vmatpush.msra.mxu2 %v1589_v2  ;;  %v1607_v12 = vld [vmem:[%s2378_s3 + $0x18] sm:$0xff] }
 0x110   :  { %v1511_v16 = vsub.f32 %v115_v29, %v284_v13  ;;  %v1525_v29 = vadd.f32 %v147_v15, %v1456_v20  ;;  %v1613_v13 = vld [vmem:[%s2378_s3 + $0x10] sm:$0xff]  ;;  %v1619_v15 = vld [vmem:[%s2378_s3 + $0x8] sm:$0xff] }
 0x112   :  { %v316_v23 = vmul.f32 %v1511_v16, %v1511_v16  ;;  %v266_v36 = vsel %vm226_vm1, %v1525_v29, 0.0 }
 0x114   :  { %v336_v25 = vsel %vm226_vm1, %v316_v23, 0.0  ;;  %v1625_v23 = vld [vmem:[%s2378_s3] sm:$0xff] }
 0x115   :  { %337 = vadd.xlane.f32.xlu1 %v336_v25  ;;  %v238_v26 = vpop.xlane.xlu1 %237  ;;  %264 = vadd.xlane.f32.xlu0 %v263_v24 }
 0x116   :  { %v285_v28 = vmul.f32 %v1488_v53, %v238_v26  ;;  %252 = vadd.xlane.f32.xlu2 %v251_v27 }
 0x118   :  { %v1527_v30 = vsub.f32 %v118_v32, %v285_v28 }
 0x11a   :  { %v317_v34 = vmul.f32 %v1527_v30, %v1527_v30 }
 0x11c   :  { %v339_v37 = vsel %vm226_vm1, %v317_v34, 0.0 }
 0x11d   :  { %v241_v39 = vpop.xlane.xlu2 %240  ;;  %340 = vadd.xlane.f32.xlu1 %v339_v37  ;;  %267 = vadd.xlane.f32.xlu0 %v266_v36 }
 0x11e   :  { %v286_v32 = vmul.f32 %v1488_v53, %v241_v39  ;;  %255 = vadd.xlane.f32.xlu2 %v254_v40 }
 0x120   :  { %v1544_v43 = vsub.f32 %v1474_v35, %v286_v32 }
 0x122   :  { %v318_v45 = vmul.f32 %v1544_v43, %v1544_v43 }
 0x124   :  { %v342_v48 = vsel %vm226_vm1, %v318_v45, 0.0 }
 0x125   :  { %v244_v49 = vpop.xlane.xlu2 %243  ;;  %343 = vadd.xlane.f32.xlu1 %v342_v48  ;;  %270 = vadd.xlane.f32.xlu0 %v269_v46 }
 0x126   :  { %v287_v35 = vmul.f32 %v1488_v53, %v244_v49  ;;  %258 = vadd.xlane.f32.xlu2 %v257_v50 }
 0x128   :  { %v1561_v52 = vsub.f32 %v1479_v38, %v287_v35 }
 0x12a   :  { %v319_v55 = vmul.f32 %v1561_v52, %v1561_v52 }
 0x12c   :  { %v345_v59 = vsel %vm226_vm1, %v319_v55, 0.0 }
 0x12d   :  { %346 = vadd.xlane.f32.xlu1 %v345_v59  ;;  %v247_v60 = vpop.xlane.xlu1 %246  ;;  %273 = vadd.xlane.f32.xlu0 %v272_v58 }
 0x12e   :  { %v288_v38 = vmul.f32 %v1488_v53, %v247_v60  ;;  %261 = vadd.xlane.f32.xlu2 %v260_v61 }
 0x130   :  { %v1575_v20 = vsub.f32 %v1484_v41, %v288_v38  ;;  %v1595_v41 = vld [vmem:[%s2378_s3 + $0x28] sm:$0xff]  ;;  %v1646_v38 = vperm.slane %v1453_v19, 2 }
 0x131   :  { %703 = vmatpush.msra.mxu2 %v1595_v41 }
 0x132   :  { %v320_v57 = vmul.f32 %v1575_v20, %v1575_v20 }
 0x133   :  { %704 = vmatpush.msra.mxu2 %v1601_v3 }
 0x134   :  { %v348_v0 = vsel %vm226_vm1, %v320_v57, 0.0 }
 0x135   :  { %349 = vadd.xlane.f32.xlu1 %v348_v0  ;;  %705 = vmatpush.msra.mxu2 %v1607_v12 }
 0x137   :  { %706 = vmatpush.msra.mxu2 %v1613_v13 }
 0x139   :  { %707 = vmatpush.msra.mxu2 %v1619_v15 }
 0x13b   :  { %708 = vmatpush.msra.mxu2 %v1625_v23 }
 0x178   :  { %v332_v24 = vpop.xlane.xlu0 %331 }
 0x179   :  { %v378_v25 = vmul.f32 %v332_v24, %v1488_v53 }
 0x17b   :  { %v394_v26 = vadd.f32 1e-05, %v378_v25 }
 0x17d   :  { %1247 = vrsqrt.f32 %v394_v26  ;;  %vm416_vm4 = vweird.f32 %v394_v26 }
 0x180   :  { %v335_v27 = vpop.xlane.xlu2 %334  ;;  %v250_v28 = vpop.xlane.xlu0 %249 }
 0x181   :  { %v379_v33 = vmul.f32 %v335_v27, %v1488_v53  ;;  %v289_v34 = vmul.f32 %v1488_v53, %v250_v28 }
 0x183   :  { %v1248_v36 = vpop.eup %1247  ;;  %v395_v37 = vadd.f32 1e-05, %v379_v33  ;;  %v1632_v39 = vsub.f32 %v1498_v62, %v289_v34 }
 0x184   :  { %v411_v40 = vmul.f32 %v1248_v36, %v394_v26  ;;  %vm417_vm3 = vweird.f32 %v1248_v36  ;;  %v1659_v26 = vperm.slane %v1453_v19, 3 }
 0x185   :  { %1249 = vrsqrt.f32 %v395_v37  ;;  %v321_v32 = vmul.f32 %v1632_v39, %v1632_v39  ;;  %vm418_vm5 = vmor %vm416_vm4, %vm417_vm3  ;;  %vm426_vm7 = vweird.f32 %v395_v37 }
 0x186   :  { %v412_v45 = vmul.f32 %v1248_v36, %v411_v40 }
 0x187   :  { %v351_v46 = vsel %vm226_vm1, %v321_v32, 0.0 }
 0x188   :  { %v413_v47 = vmul.f32 0.5, %v412_v45  ;;  %v338_v48 = vpop.xlane.xlu1 %337  ;;  %352 = vadd.xlane.f32.xlu2 %v351_v46  ;;  %v265_v49 = vpop.xlane.xlu0 %264 }
 0x189   :  { %v380_v50 = vmul.f32 %v338_v48, %v1488_v53  ;;  %v253_v35 = vpop.xlane.xlu2 %252  ;;  %v294_v55 = vmul.f32 %v1488_v53, %v265_v49 }
 0x18a   :  { %v414_v58 = vsub.f32 1.5, %v413_v47  ;;  %v290_v62 = vmul.f32 %v1488_v53, %v253_v35 }
 0x18b   :  { %v1250_v59 = vpop.eup %1249  ;;  %v1640_v60 = vadd.f32 1e-05, %v380_v50  ;;  %v1643_v61 = vsub.f32 %v1509_v14, %v294_v55 }
 0x18c   :  { %v415_v57 = vmul.f32 %v1248_v36, %v414_v58  ;;  %v421_v0 = vmul.f32 %v1250_v59, %v395_v37  ;;  %v1649_v24 = vsub.f32 %v1514_v22, %v290_v62  ;;  %vm427_vm6 = vweird.f32 %v1250_v59 }
 0x18d   :  { %1251 = vrsqrt.f32 %v1640_v60  ;;  %v326_v25 = vmul.f32 %v1643_v61, %v1643_v61  ;;  %vm428_vm8 = vmor %vm426_vm7, %vm427_vm6  ;;  %vm436_vm10 = vweird.f32 %v1640_v60 }
 0x18e   :  { %v419_v27 = vsel %vm418_vm5, %v1248_v36, %v415_v57  ;;  %v422_v28 = vmul.f32 %v1250_v59, %v421_v0  ;;  %v322_v14 = vmul.f32 %v1649_v24, %v1649_v24 }
 0x18f   :  { %v366_v33 = vsel %vm226_vm1, %v326_v25, 0.0  ;;  %v571_v34 = vmul.f32 %v1646_v38, %v419_v27 }
 0x190   :  { %v423_v22 = vmul.f32 0.5, %v422_v28  ;;  %v341_v40 = vpop.xlane.xlu1 %340  ;;  %v354_v32 = vsel %vm226_vm1, %v322_v14, 0.0  ;;  %367 = vadd.xlane.f32.xlu1 %v366_v33  ;;  %v268_v45 = vpop.xlane.xlu0 %267 }
 0x191   :  { %v381_v46 = vmul.f32 %v341_v40, %v1488_v53  ;;  %355 = vadd.xlane.f32.xlu0 %v354_v32  ;;  %v256_v36 = vpop.xlane.xlu2 %255  ;;  %v295_v47 = vmul.f32 %v1488_v53, %v268_v45  ;;  %v587_v48 = vmul.f32 %v571_v34, %v1491_v56 }
 0x192   :  { %v424_v49 = vsub.f32 1.5, %v423_v22  ;;  %v291_v50 = vmul.f32 %v1488_v53, %v256_v36 }
 0x193   :  { %v1252_v35 = vpop.eup %1251  ;;  %v1666_v55 = vadd.f32 1e-05, %v381_v46  ;;  %v1669_v58 = vsub.f32 %v1525_v29, %v295_v47  ;;  %v604_v62 = vadd.f32 %v1659_v26, %v587_v48 }
 0x194   :  { %v425_v57 = vmul.f32 %v1250_v59, %v424_v49  ;;  %v431_v0 = vmul.f32 %v1252_v35, %v1640_v60  ;;  %v1674_v25 = vsub.f32 %v1530_v31, %v291_v50  ;;  %vm437_vm9 = vweird.f32 %v1252_v35 }
 0x195   :  { %1253 = vrsqrt.f32 %v1666_v55  ;;  %v620_v56 = vmax.f32 %v604_v62, 0.0  ;;  %v327_v27 = vmul.f32 %v1669_v58, %v1669_v58  ;;  %vm438_vm11 = vmor %vm436_vm10, %vm437_vm9  ;;  %vm446_vm13 = vweird.f32 %v1666_v55 }
 0x196   :  { %v429_v28 = vsel %vm428_vm8, %v1250_v59, %v425_v57  ;;  %v432_v14 = vmul.f32 %v1252_v35, %v431_v0  ;;  %v323_v29 = vmul.f32 %v1674_v25, %v1674_v25 }
 0x197   :  { %1212 = vmatmul.msk.f32.vlgmr.msra.gmra.mxu2 %vm226_vm1, %v620_v56  ;;  %v369_v37 = vsel %vm226_vm1, %v327_v27, 0.0  ;;  %v572_v33 = vmul.f32 %v1646_v38, %v429_v28 }
 0x198   :  { %v433_v31 = vmul.f32 0.5, %v432_v14  ;;  %v344_v34 = vpop.xlane.xlu1 %343  ;;  %v357_v22 = vsel %vm226_vm1, %v323_v29, 0.0  ;;  %v271_v40 = vpop.xlane.xlu0 %270 }
 0x199   :  { %v382_v32 = vmul.f32 %v344_v34, %v1488_v53  ;;  %v259_v45 = vpop.xlane.xlu2 %258  ;;  %358 = vadd.xlane.f32.xlu2 %v357_v22  ;;  %370 = vadd.xlane.f32.xlu0 %v369_v37  ;;  %v296_v59 = vmul.f32 %v1488_v53, %v271_v40  ;;  %v588_v46 = vmul.f32 %v572_v33, %v1500_v63 }
 0x19a   :  { %v434_v36 = vsub.f32 1.5, %v433_v31  ;;  %v292_v47 = vmul.f32 %v1488_v53, %v259_v45 }
 0x19b   :  { %v1254_v48 = vpop.eup %1253  ;;  %v1689_v49 = vadd.f32 1e-05, %v382_v32  ;;  %v1692_v50 = vsub.f32 %v1541_v42, %v296_v59  ;;  %v605_v62 = vadd.f32 %v1659_v26, %v588_v46 }
 0x19c   :  { %v435_v57 = vmul.f32 %v1252_v35, %v434_v36  ;;  %v441_v0 = vmul.f32 %v1254_v48, %v1666_v55  ;;  %v1698_v56 = vsub.f32 %v1547_v44, %v292_v47  ;;  %vm447_vm12 = vweird.f32 %v1254_v48 }
 0x19d   :  { %1255 = vrsqrt.f32 %v1689_v49  ;;  %v621_v63 = vmax.f32 %v605_v62, 0.0  ;;  %v328_v27 = vmul.f32 %v1692_v50, %v1692_v50  ;;  %vm448_vm14 = vmor %vm446_vm13, %vm447_vm12  ;;  %vm456_vm2 = vweird.f32 %v1689_v49 }
 0x19e   :  { %v439_v28 = vsel %vm438_vm11, %v1252_v35, %v435_v57  ;;  %v442_v42 = vmul.f32 %v1254_v48, %v441_v0  ;;  %v324_v14 = vmul.f32 %v1698_v56, %v1698_v56 }
 0x19f   :  { %1213 = vmatmul.msk.f32.gmra.mxu2 %vm226_vm1, %v621_v63  ;;  %v372_v60 = vsel %vm226_vm1, %v328_v27, 0.0  ;;  %v573_v29 = vmul.f32 %v1646_v38, %v439_v28 }
 0x1a0   :  { %v443_v44 = vmul.f32 0.5, %v442_v42  ;;  %v347_v37 = vpop.xlane.xlu1 %346  ;;  %v360_v33 = vsel %vm226_vm1, %v324_v14, 0.0  ;;  %v274_v31 = vpop.xlane.xlu0 %273 }
 0x1a1   :  { %v383_v34 = vmul.f32 %v347_v37, %v1488_v53  ;;  %v262_v22 = vpop.xlane.xlu2 %261  ;;  %361 = vadd.xlane.f32.xlu1 %v360_v33  ;;  %373 = vadd.xlane.f32.xlu2 %v372_v60  ;;  %v297_v35 = vmul.f32 %v1488_v53, %v274_v31  ;;  %v589_v40 = vmul.f32 %v573_v29, %v1511_v16 }
 0x1a2   :  { %v444_v32 = vsub.f32 1.5, %v443_v44  ;;  %v293_v45 = vmul.f32 %v1488_v53, %v262_v22 }
 0x1a3   :  { %v1256_v59 = vpop.eup %1255  ;;  %v399_v46 = vadd.f32 1e-05, %v383_v34  ;;  %v1714_v36 = vsub.f32 %v1558_v51, %v297_v35  ;;  %v606_v47 = vadd.f32 %v1659_v26, %v589_v40 }
 0x1a4   :  { %v445_v62 = vmul.f32 %v1254_v48, %v444_v32  ;;  %v451_v57 = vmul.f32 %v1256_v59, %v1689_v49  ;;  %v1720_v0 = vsub.f32 %v1564_v54, %v293_v45  ;;  %v159_v54 = vld [vmem:[%s2379_s2 + $0x18] sm:$0xff]  ;;  %vm457_vm15 = vweird.f32 %v1256_v59 }
 0x1a5   :  { %1257 = vrsqrt.f32 %v399_v46  ;;  %v622_v16 = vmax.f32 %v606_v47, 0.0  ;;  %v329_v63 = vmul.f32 %v1714_v36, %v1714_v36  ;;  %1232 = vmatpush.msrb.mxu3 %v159_v54  ;;  %173 = vmatpush.msra.mxu1 %v159_v54  ;;  %vm458_vm3 = vmor %vm456_vm2, %vm457_vm15  ;;  %vm466_vm5 = vweird.f32 %v399_v46 }
 0x1a6   :  { %v449_v27 = vsel %vm448_vm14, %v1254_v48, %v445_v62  ;;  %v452_v28 = vmul.f32 %v1256_v59, %v451_v57  ;;  %v325_v51 = vmul.f32 %v1720_v0, %v1720_v0 }
 0x1a7   :  { %1214 = vmatmul.msk.f32.gmra.mxu2 %vm226_vm1, %v622_v16  ;;  %v375_v55 = vsel %vm226_vm1, %v329_v63, 0.0  ;;  %v574_v42 = vmul.f32 %v1646_v38, %v449_v27 }
 0x1a8   :  { %v453_v14 = vmul.f32 0.5, %v452_v28  ;;  %v350_v60 = vpop.xlane.xlu1 %349  ;;  %v363_v29 = vsel %vm226_vm1, %v325_v51, 0.0 }
 0x1a9   :  { %v384_v48 = vmul.f32 %v350_v60, %v1488_v53  ;;  %364 = vadd.xlane.f32.xlu0 %v363_v29  ;;  %376 = vadd.xlane.f32.xlu1 %v375_v55  ;;  %v590_v44 = vmul.f32 %v574_v42, %v1527_v30 }
 0x1aa   :  { %v454_v37 = vsub.f32 1.5, %v453_v14 }
 0x1ab   :  { %v1258_v33 = vpop.eup %1257  ;;  %v400_v31 = vadd.f32 1e-05, %v384_v48  ;;  %v607_v34 = vadd.f32 %v1659_v26, %v590_v44 }
 0x1ac   :  { %v455_v22 = vmul.f32 %v1256_v59, %v454_v37  ;;  %v461_v35 = vmul.f32 %v1258_v33, %v399_v46  ;;  %vm467_vm4 = vweird.f32 %v1258_v33 }
 0x1ad   :  { %1259 = vrsqrt.f32 %v400_v31  ;;  %v623_v40 = vmax.f32 %v607_v34, 0.0  ;;  %vm468_vm6 = vmor %vm466_vm5, %vm467_vm4  ;;  %vm476_vm8 = vweird.f32 %v400_v31 }
 0x1ae   :  { %v459_v32 = vsel %vm458_vm3, %v1256_v59, %v455_v22  ;;  %v462_v45 = vmul.f32 %v1258_v33, %v461_v35 }
 0x1af   :  { %1215 = vmatmul.msk.f32.gmra.mxu2 %vm226_vm1, %v623_v40  ;;  %v575_v47 = vmul.f32 %v1646_v38, %v459_v32 }
 0x1b0   :  { %v463_v30 = vmul.f32 0.5, %v462_v45 }
 0x1b1   :  { %v591_v62 = vmul.f32 %v575_v47, %v1544_v43 }
 0x1b2   :  { %v464_v57 = vsub.f32 1.5, %v463_v30 }
 0x1b3   :  { %v1260_v16 = vpop.eup %1259  ;;  %v608_v63 = vadd.f32 %v1659_v26, %v591_v62 }
 0x1b4   :  { %v465_v27 = vmul.f32 %v1258_v33, %v464_v57  ;;  %v471_v49 = vmul.f32 %v1260_v16, %v400_v31  ;;  %vm477_vm7 = vweird.f32 %v1260_v16  ;;  %v157_v31 = vld [vmem:[%s2379_s2 + $0x8] sm:$0xff] }
 0x1b5   :  { %v624_v28 = vmax.f32 %v608_v63, 0.0  ;;  %vm478_vm9 = vmor %vm476_vm8, %vm477_vm7 }
 0x1b6   :  { %v469_v51 = vsel %vm468_vm6, %v1258_v33, %v465_v27  ;;  %v472_v59 = vmul.f32 %v1260_v16, %v471_v49 }
 0x1b7   :  { %1216 = vmatmul.msk.f32.gmra.mxu2 %vm226_vm1, %v624_v28  ;;  %v576_v55 = vmul.f32 %v1646_v38, %v469_v51 }
 0x1b8   :  { %v473_v42 = vmul.f32 0.5, %v472_v59 }
 0x1b9   :  { %v592_v54 = vmul.f32 %v576_v55, %v1561_v52  ;;  %v158_v52 = vld [vmem:[%s2379_s2 + $0x10] sm:$0xff] }
 0x1ba   :  { %v474_v43 = vsub.f32 1.5, %v473_v42  ;;  %1233 = vmatpush.msrb.mxu3 %v158_v52  ;;  %174 = vmatpush.msra.mxu1 %v158_v52 }
 0x1bb   :  { %v609_v14 = vadd.f32 %v1659_v26, %v592_v54 }
 0x1bc   :  { %v475_v60 = vmul.f32 %v1260_v16, %v474_v43  ;;  %1234 = vmatpush.msrb.mxu3 %v157_v31  ;;  %175 = vmatpush.msra.mxu1 %v157_v31 }
 0x1bd   :  { %v625_v46 = vmax.f32 %v609_v14, 0.0 }
 0x1be   :  { %v479_v29 = vsel %vm478_vm9, %v1260_v16, %v475_v60  ;;  %v1801_v60 = vperm.slane %v1453_v19, 4 }
 0x1bf   :  { %1217 = vmatmul.msk.f32.gmra.mxu2 %vm226_vm1, %v625_v46  ;;  %v577_v48 = vmul.f32 %v1646_v38, %v479_v29 }
 0x1c1   :  { %v593_v44 = vmul.f32 %v577_v48, %v1575_v20  ;;  %v156_v20 = vld [vmem:[%s2379_s2] sm:$0xff] }
 0x1c2   :  { %1235 = vmatpush.msrb.mxu3 %v156_v20  ;;  %176 = vmatpush.msra.mxu1 %v156_v20 }
 0x1c3   :  { %v610_v37 = vadd.f32 %v1659_v26, %v593_v44  ;;  %1209 = vmatmul.msk.f32.vlgmr.msrb.gmra.mxu3 %vm42_vm0, %v1439_v17  ;;  %1196 = vmatmul.msk.f32.vlgmr.msra.gmra.mxu1 %vm42_vm0, %v1363_v4 }
 0x1c4   :  { %1236 = vmatpush.msra.mxu3 %v1583_v1 }
 0x1c5   :  { %v626_v33 = vmax.f32 %v610_v37, 0.0 }
 0x1c6   :  { %1237 = vmatpush.msra.mxu3 %v1589_v2 }
 0x1c7   :  { %1218 = vmatmul.msk.f32.gmra.mxu2 %vm226_vm1, %v626_v33 }
 0x1c8   :  { %1238 = vmatpush.msra.mxu3 %v1595_v41 }
 0x1ca   :  { %1239 = vmatpush.msra.mxu3 %v1601_v3 }
 0x1cb   :  { %1210 = vmatmul.msk.f32.gmra.mxu3 %vm42_vm0, %v1446_v18  ;;  %1197 = vmatmul.msk.f32.gmra.mxu1 %vm42_vm0, %v1370_v5 }
 0x1cc   :  { %1240 = vmatpush.msra.mxu3 %v1607_v12 }
 0x1ce   :  { %1241 = vmatpush.msra.mxu3 %v1613_v13 }
 0x1d0   :  { %1242 = vmatpush.msra.mxu3 %v1619_v15 }
 0x1d2   :  { %1243 = vmatpush.msra.mxu3 %v1625_v23 }
 0x1d3   :  { %1211 = vmatmul.msk.f32.gmra.mxu3 %vm42_vm0, %v1461_v21  ;;  %1198 = vmatmul.msk.f32.gmra.mxu1 %vm42_vm0, %v1377_v6 }
 0x1db   :  { %1199 = vmatmul.msk.f32.gmra.mxu1 %vm42_vm0, %v1384_v7 }
 0x1e3   :  { %1200 = vmatmul.msk.f32.gmra.mxu1 %vm42_vm0, %v1391_v8 }
 0x1eb   :  { %1201 = vmatmul.msk.f32.gmra.mxu1 %vm42_vm0, %v1398_v9 }
 0x1f3   :  { %1202 = vmatmul.msk.f32.gmra.mxu1 %vm42_vm0, %v1405_v10 }
 0x1fb   :  { %v353_v4 = vpop.xlane.xlu2 %352  ;;  %1203 = vmatmul.msk.f32.gmra.mxu1 %vm42_vm0, %v1412_v11 }
 0x1fc   :  { %v385_v17 = vmul.f32 %v353_v4, %v1488_v53 }
 0x1fe   :  { %v401_v18 = vadd.f32 1e-05, %v385_v17 }
 0x200   :  { %1261 = vrsqrt.f32 %v401_v18  ;;  %vm486_vm11 = vweird.f32 %v401_v18 }
 0x203   :  { %v368_v5 = vpop.xlane.xlu1 %367 }
 0x204   :  { %v390_v1 = vmul.f32 %v368_v5, %v1488_v53  ;;  %v356_v2 = vpop.xlane.xlu0 %355 }
 0x205   :  { %v386_v41 = vmul.f32 %v356_v2, %v1488_v53 }
 0x206   :  { %v1262_v3 = vpop.eup %1261  ;;  %v406_v12 = vadd.f32 1e-05, %v390_v1 }
 0x207   :  { %v481_v13 = vmul.f32 %v1262_v3, %v401_v18  ;;  %v402_v21 = vadd.f32 1e-05, %v386_v41  ;;  %vm487_vm10 = vweird.f32 %v1262_v3 }
 0x208   :  { %1263 = vrsqrt.f32 %v406_v12  ;;  %vm488_vm12 = vmor %vm486_vm11, %vm487_vm10  ;;  %vm536_vm15 = vweird.f32 %v406_v12 }
 0x209   :  { %v482_v15 = vmul.f32 %v1262_v3, %v481_v13  ;;  %1265 = vrsqrt.f32 %v402_v21  ;;  %vm496_vm3 = vweird.f32 %v402_v21 }
 0x20b   :  { %v483_v6 = vmul.f32 0.5, %v482_v15 }
 0x20c   :  { %v359_v23 = vpop.xlane.xlu2 %358  ;;  %v371_v34 = vpop.xlane.xlu0 %370 }
 0x20d   :  { %v484_v22 = vsub.f32 1.5, %v483_v6  ;;  %v387_v7 = vmul.f32 %v359_v23, %v1488_v53  ;;  %v391_v35 = vmul.f32 %v371_v34, %v1488_v53 }
 0x20e   :  { %v1264_v40 = vpop.eup %1263 }
 0x20f   :  { %v1266_v32 = vpop.eup %1265  ;;  %v485_v45 = vmul.f32 %v1262_v3, %v484_v22  ;;  %v531_v47 = vmul.f32 %v1264_v40, %v406_v12  ;;  %v1788_v30 = vadd.f32 1e-05, %v387_v7  ;;  %v1790_v57 = vadd.f32 1e-05, %v391_v35 }
 0x210   :  { %v491_v62 = vmul.f32 %v1266_v32, %v402_v21  ;;  %vm537_vm13 = vweird.f32 %v1264_v40  ;;  %vm497_vm14 = vweird.f32 %v1266_v32 }
 0x211   :  { %v489_v8 = vsel %vm488_vm12, %v1262_v3, %v485_v45  ;;  %v532_v16 = vmul.f32 %v1264_v40, %v531_v47  ;;  %1267 = vrsqrt.f32 %v1788_v30  ;;  %vm538_vm2 = vmor %vm536_vm15, %vm537_vm13  ;;  %vm506_vm5 = vweird.f32 %v1788_v30 }
 0x212   :  { %v492_v63 = vmul.f32 %v1266_v32, %v491_v62  ;;  %1269 = vrsqrt.f32 %v1790_v57  ;;  %v578_v27 = vmul.f32 %v1646_v38, %v489_v8  ;;  %vm1815_vm4 = vmor %vm496_vm3, %vm497_vm14  ;;  %vm546_vm9 = vweird.f32 %v1790_v57 }
 0x213   :  { %v533_v49 = vmul.f32 0.5, %v532_v16 }
 0x214   :  { %v493_v28 = vmul.f32 0.5, %v492_v63  ;;  %v362_v51 = vpop.xlane.xlu1 %361  ;;  %v374_v59 = vpop.xlane.xlu2 %373  ;;  %v594_v55 = vmul.f32 %v578_v27, %v1632_v39 }
 0x215   :  { %v534_v42 = vsub.f32 1.5, %v533_v49  ;;  %v388_v54 = vmul.f32 %v362_v51, %v1488_v53  ;;  %v392_v43 = vmul.f32 %v374_v59, %v1488_v53 }
 0x216   :  { %v494_v14 = vsub.f32 1.5, %v493_v28  ;;  %v611_v46 = vadd.f32 %v1659_v26, %v594_v55 }
 0x217   :  { %v1804_v29 = vpop.eup %1267  ;;  %v535_v9 = vmul.f32 %v1264_v40, %v534_v42  ;;  %v1806_v48 = vadd.f32 1e-05, %v388_v54  ;;  %v1808_v39 = vadd.f32 1e-05, %v392_v43 }
 0x218   :  { %v1810_v44 = vpop.eup %1269  ;;  %v495_v37 = vmul.f32 %v1266_v32, %v494_v14  ;;  %v501_v33 = vmul.f32 %v1804_v29, %v1788_v30  ;;  %v627_v19 = vmax.f32 %v611_v46, 0.0  ;;  %vm507_vm6 = vweird.f32 %v1804_v29 }
 0x219   :  { %v539_v52 = vsel %vm538_vm2, %v1264_v40, %v535_v9  ;;  %v541_v20 = vmul.f32 %v1810_v44, %v1790_v57  ;;  %1271 = vrsqrt.f32 %v1806_v48  ;;  %vm547_vm7 = vweird.f32 %v1810_v44  ;;  %vm1855_vm8 = vmor %vm506_vm5, %vm507_vm6 }
 0x21a   :  { %v583_v4 = vmul.f32 %v1646_v38, %v539_v52  ;;  %v499_v17 = vsel %vm1815_vm4, %v1266_v32, %v495_v37  ;;  %v502_v18 = vmul.f32 %v1804_v29, %v501_v33  ;;  %v710_v5 = vpop.f32.mrf.mxu2  ;;  %1219 = vmatmul.msk.f32.gmra.mxu2 %vm226_vm1, %v627_v19  ;;  %1273 = vrsqrt.f32 %v1808_v39  ;;  %vm548_vm10 = vmor %vm546_vm9, %vm547_vm7 }
 0x21b   :  { %v542_v1 = vmul.f32 %v1810_v44, %v541_v20  ;;  %v1830_v2 = vadd.f32 %v710_v5, %v1801_v60  ;;  %v579_v21 = vmul.f32 %v1646_v38, %v499_v17  ;;  %vm516_vm12 = vweird.f32 %v1806_v48 }
 0x21c   :  { %v599_v41 = vmul.f32 %v583_v4, %v1643_v61  ;;  %v503_v3 = vmul.f32 0.5, %v502_v18  ;;  %v377_v12 = vpop.xlane.xlu1 %376  ;;  %v365_v13 = vpop.xlane.xlu0 %364  ;;  %vm556_vm15 = vweird.f32 %v1808_v39 }
 0x21d   :  { %v543_v15 = vmul.f32 0.5, %v542_v1  ;;  %v393_v6 = vmul.f32 %v377_v12, %v1488_v53  ;;  %v389_v23 = vmul.f32 %v365_v13, %v1488_v53  ;;  %v758_v34 = vsel %vm226_vm1, %v1830_v2, 0.0 }
 0x21e   :  { %v504_v22 = vsub.f32 1.5, %v503_v3  ;;  %759 = vadd.xlane.f32.xlu2 %v758_v34  ;;  %v595_v10 = vmul.f32 %v579_v21, %v1649_v24  ;;  %v616_v30 = vadd.f32 %v1659_v26, %v599_v41 }
 0x21f   :  { %v1843_v61 = vpop.eup %1271  ;;  %v544_v7 = vsub.f32 1.5, %v543_v15  ;;  %v1846_v35 = vadd.f32 1e-05, %v393_v6  ;;  %v1848_v40 = vadd.f32 1e-05, %v389_v23 }
 0x220   :  { %v505_v32 = vmul.f32 %v1804_v29, %v504_v22  ;;  %v511_v45 = vmul.f32 %v1843_v61, %v1806_v48  ;;  %v612_v47 = vadd.f32 %v1659_v26, %v595_v10  ;;  %v1274_v62 = vpop.eup %1273  ;;  %v632_v42 = vmax.f32 %v616_v30, 0.0 }
 0x221   :  { %v545_v8 = vmul.f32 %v1810_v44, %v544_v7  ;;  %1275 = vrsqrt.f32 %v1846_v35  ;;  %v551_v27 = vmul.f32 %v1274_v62, %v1808_v39  ;;  %vm517_vm11 = vweird.f32 %v1843_v61  ;;  %v1311_v39 = vld [vmem:[%s2376_s0 + $0x40] sm:$0xff] }
 0x222   :  { %v509_v16 = vsel %vm1855_vm8, %v1804_v29, %v505_v32  ;;  %v512_v63 = vmul.f32 %v1843_v61, %v511_v45  ;;  %v713_v49 = vpop.f32.mrf.mxu2  ;;  %1277 = vrsqrt.f32 %v1848_v40  ;;  %v628_v57 = vmax.f32 %v612_v47, 0.0  ;;  %1224 = vmatmul.msk.f32.vlgmr.msra.gmra.mxu3 %vm226_vm1, %v632_v42  ;;  %vm1886_vm14 = vmor %vm516_vm12, %vm517_vm11  ;;  %1204 = vmatmul.msk.f32.gmra.mxu1 %vm42_vm0, %v1311_v39 }
 0x223   :  { %v549_v28 = vsel %vm548_vm10, %v1810_v44, %v545_v8  ;;  %v1870_v51 = vadd.f32 %v713_v49, %v1801_v60  ;;  %v552_v55 = vmul.f32 %v1274_v62, %v551_v27  ;;  %v580_v54 = vmul.f32 %v1646_v38, %v509_v16  ;;  %v1312_v8 = vld [vmem:[%s2376_s0 + $0x48] sm:$0xff] }
 0x224   :  { %v513_v59 = vmul.f32 0.5, %v512_v63  ;;  %1220 = vmatmul.msk.f32.gmra.mxu2 %vm226_vm1, %v628_v57  ;;  %v584_v14 = vmul.f32 %v1646_v38, %v549_v28  ;;  %vm557_vm13 = vweird.f32 %v1274_v62  ;;  %vm566_vm4 = vweird.f32 %v1846_v35 }
 0x225   :  { %v761_v43 = vsel %vm226_vm1, %v1870_v51, 0.0  ;;  %v553_v29 = vmul.f32 0.5, %v552_v55  ;;  %v596_v11 = vmul.f32 %v580_v54, %v1674_v25  ;;  %vm558_vm2 = vmor %vm556_vm15, %vm557_vm13  ;;  %vm526_vm7 = vweird.f32 %v1848_v40 }
 0x226   :  { %v514_v46 = vsub.f32 1.5, %v513_v59  ;;  %762 = vadd.xlane.f32.xlu0 %v761_v43  ;;  %v600_v44 = vmul.f32 %v584_v14, %v1669_v58  ;;  %v1314_v43 = vld [vmem:[%s2376_s0 + $0x58] sm:$0xff] }
 0x227   :  { %v1276_v9 = vpop.eup %1275  ;;  %v554_v33 = vsub.f32 1.5, %v553_v29  ;;  %v613_v25 = vadd.f32 %v1659_v26, %v596_v11  ;;  %v1315_v11 = vld [vmem:[%s2376_s0 + $0x60] sm:$0xff] }
 0x228   :  { %v515_v37 = vmul.f32 %v1843_v61, %v514_v46  ;;  %v561_v19 = vmul.f32 %v1276_v9, %v1846_v35  ;;  %v1278_v52 = vpop.eup %1277  ;;  %v617_v20 = vadd.f32 %v1659_v26, %v600_v44  ;;  %vm567_vm3 = vweird.f32 %v1276_v9 }
 0x229   :  { %v555_v48 = vmul.f32 %v1274_v62, %v554_v33  ;;  %v521_v17 = vmul.f32 %v1278_v52, %v1848_v40  ;;  %v629_v1 = vmax.f32 %v613_v25, 0.0  ;;  %vm527_vm5 = vweird.f32 %v1278_v52  ;;  %vm568_vm6 = vmor %vm566_vm4, %vm567_vm3 }
 0x22a   :  { %v519_v58 = vsel %vm1886_vm14, %v1843_v61, %v515_v37  ;;  %v562_v4 = vmul.f32 %v1276_v9, %v561_v19  ;;  %v716_v18 = vpop.f32.mrf.mxu2  ;;  %v633_v41 = vmax.f32 %v617_v20, 0.0  ;;  %vm528_vm8 = vmor %vm526_vm7, %vm527_vm5  ;;  %1205 = vmatmul.msk.f32.gmra.mxu1 %vm42_vm0, %v1312_v8 }
 0x22b   :  { %v1898_v5 = vadd.f32 %v716_v18, %v1801_v60  ;;  %v559_v3 = vsel %vm558_vm2, %v1274_v62, %v555_v48  ;;  %v522_v13 = vmul.f32 %v1278_v52, %v521_v17  ;;  %v581_v21 = vmul.f32 %v1646_v38, %v519_v58 }
 0x22c   :  { %v563_v12 = vmul.f32 0.5, %v562_v4  ;;  %1221 = vmatmul.msk.f32.gmra.mxu2 %vm226_vm1, %v629_v1  ;;  %v585_v6 = vmul.f32 %v1646_v38, %v559_v3  ;;  %1225 = vmatmul.msk.f32.gmra.mxu3 %vm226_vm1, %v633_v41 }
 0x22d   :  { %v764_v15 = vsel %vm226_vm1, %v1898_v5, 0.0  ;;  %v523_v34 = vmul.f32 0.5, %v522_v13  ;;  %v597_v22 = vmul.f32 %v581_v21, %v1698_v56 }
 0x22e   :  { %v564_v23 = vsub.f32 1.5, %v563_v12  ;;  %765 = vadd.xlane.f32.xlu1 %v764_v15  ;;  %v601_v10 = vmul.f32 %v585_v6, %v1692_v50 }
 0x22f   :  { %v524_v7 = vsub.f32 1.5, %v523_v34  ;;  %v614_v32 = vadd.f32 %v1659_v26, %v597_v22 }
 0x230   :  { %v565_v61 = vmul.f32 %v1276_v9, %v564_v23  ;;  %v618_v45 = vadd.f32 %v1659_v26, %v601_v10 }
 0x231   :  { %v525_v30 = vmul.f32 %v1278_v52, %v524_v7  ;;  %v630_v24 = vmax.f32 %v614_v32, 0.0 }
 0x232   :  { %v569_v47 = vsel %vm568_vm6, %v1276_v9, %v565_v61  ;;  %v719_v62 = vpop.f32.mrf.mxu2  ;;  %v634_v35 = vmax.f32 %v618_v45, 0.0 }
 0x233   :  { %v1917_v56 = vadd.f32 %v719_v62, %v1801_v60  ;;  %v586_v50 = vmul.f32 %v1646_v38, %v569_v47  ;;  %v529_v16 = vsel %vm528_vm8, %v1278_v52, %v525_v30 }
 0x234   :  { %1222 = vmatmul.msk.f32.gmra.mxu2 %vm226_vm1, %v630_v24  ;;  %v582_v63 = vmul.f32 %v1646_v38, %v529_v16  ;;  %1226 = vmatmul.msk.f32.gmra.mxu3 %vm226_vm1, %v634_v35  ;;  %v1313_v38 = vld [vmem:[%s2376_s0 + $0x50] sm:$0xff] }
 0x235   :  { %v767_v40 = vsel %vm226_vm1, %v1917_v56, 0.0  ;;  %v602_v27 = vmul.f32 %v586_v50, %v1714_v36  ;;  %1206 = vmatmul.msk.f32.gmra.mxu1 %vm42_vm0, %v1313_v38 }
 0x236   :  { %768 = vadd.xlane.f32.xlu2 %v767_v40  ;;  %v598_v49 = vmul.f32 %v582_v63, %v1720_v0 }
 0x237   :  { %v619_v28 = vadd.f32 %v1659_v26, %v602_v27 }
 0x238   :  { %v615_v57 = vadd.f32 %v1659_v26, %v598_v49 }
 0x239   :  { %v635_v55 = vmax.f32 %v619_v28, 0.0 }
 0x23a   :  { %v722_v59 = vpop.f32.mrf.mxu2  ;;  %v631_v54 = vmax.f32 %v615_v57, 0.0 }
 0x23b   :  { %v1934_v42 = vadd.f32 %v722_v59, %v1801_v60 }
 0x23c   :  { %1223 = vmatmul.msk.f32.gmra.mxu2 %vm226_vm1, %v631_v54  ;;  %1227 = vmatmul.msk.f32.gmra.mxu3 %vm226_vm1, %v635_v55 }
 0x23d   :  { %v770_v36 = vsel %vm226_vm1, %v1934_v42, 0.0  ;;  %1207 = vmatmul.msk.f32.gmra.mxu1 %vm42_vm0, %v1314_v43 }
 0x23e   :  { %771 = vadd.xlane.f32.xlu0 %v770_v36 }
 0x242   :  { %v725_v26 = vpop.f32.mrf.mxu2 }
 0x243   :  { %v1945_v0 = vadd.f32 %v725_v26, %v1801_v60 }
 0x245   :  { %v773_v14 = vsel %vm226_vm1, %v1945_v0, 0.0  ;;  %1208 = vmatmul.msk.f32.gmra.mxu1 %vm42_vm0, %v1315_v11 }
 0x246   :  { %774 = vadd.xlane.f32.xlu1 %v773_v14  ;;  %v1962_v44 = vpop.f32.mrf.mxu3 }
 0x24a   :  { %v728_v46 = vpop.f32.mrf.mxu2 }
 0x24b   :  { %v1954_v29 = vadd.f32 %v728_v46, %v1801_v60 }
 0x24d   :  { %v776_v9 = vsel %vm226_vm1, %v1954_v29, 0.0 }
 0x24e   :  { %777 = vadd.xlane.f32.xlu2 %v776_v9  ;;  %v1964_v37 = vpop.f32.mrf.mxu3 }
 0x256   :  { %v1969_v52 = vpop.f32.mrf.mxu3 }
 0x291   :  { %v760_v15 = vpop.xlane.xlu2 %759 }
 0x292   :  { %v806_v23 = vmul.f32 %v760_v15, %v1488_v53 }
 0x294   :  { %v2005_v45 = vsub.f32 %v1830_v2, %v806_v23 }
 0x296   :  { %v838_v63 = vmul.f32 %v2005_v45, %v2005_v45 }
 0x298   :  { %v854_v57 = vsel %vm226_vm1, %v838_v63, 0.0 }
 0x299   :  { %v763_v62 = vpop.xlane.xlu0 %762 }
 0x29a   :  { %v807_v2 = vmul.f32 %v763_v62, %v1488_v53 }
 0x29c   :  { %v2027_v49 = vsub.f32 %v1870_v51, %v807_v2 }
 0x29d   :  { %v731_v33 = vpop.f32.mrf.mxu2 }
 0x29e   :  { %v1967_v19 = vadd.f32 %v731_v33, %v1801_v60  ;;  %v839_v26 = vmul.f32 %v2027_v49, %v2027_v49 }
 0x2a0   :  { %v779_v31 = vsel %vm226_vm1, %v1967_v19, 0.0  ;;  %v857_v11 = vsel %vm226_vm1, %v839_v26, 0.0 }
 0x2a1   :  { %780 = vadd.xlane.f32.xlu0 %v779_v31  ;;  %v766_v6 = vpop.xlane.xlu1 %765 }
 0x2a2   :  { %v808_v22 = vmul.f32 %v766_v6, %v1488_v53 }
 0x2a4   :  { %v2012_v24 = vsub.f32 %v1898_v5, %v808_v22  ;;  %v2082_v22 = vpop.f32.mrf.mxu1 }
 0x2a5   :  { %v746_v58 = vpop.f32.mrf.mxu3 }
 0x2a6   :  { %v1984_v41 = vadd.f32 %v746_v58, %v1801_v60  ;;  %v840_v27 = vmul.f32 %v2012_v24, %v2012_v24 }
 0x2a7   :  { %v734_v25 = vpop.f32.mrf.mxu2 }
 0x2a8   :  { %v1974_v20 = vadd.f32 %v734_v25, %v1801_v60  ;;  %v794_v21 = vsel %vm226_vm1, %v1984_v41, 0.0  ;;  %v860_v38 = vsel %vm226_vm1, %v840_v27, 0.0 }
 0x2a9   :  { %v769_v35 = vpop.xlane.xlu2 %768 }
 0x2aa   :  { %v782_v48 = vsel %vm226_vm1, %v1974_v20, 0.0  ;;  %v809_v16 = vmul.f32 %v769_v35, %v1488_v53 }
 0x2ab   :  { %783 = vadd.xlane.f32.xlu1 %v782_v48 }
 0x2ac   :  { %v2030_v28 = vsub.f32 %v1917_v56, %v809_v16  ;;  %v2099_v16 = vpop.f32.mrf.mxu1 }
 0x2ae   :  { %v841_v36 = vmul.f32 %v2030_v28, %v2030_v28 }
 0x2af   :  { %v737_v4 = vpop.f32.mrf.mxu2  ;;  %v749_v18 = vpop.f32.mrf.mxu3 }
 0x2b0   :  { %v1979_v17 = vadd.f32 %v737_v4, %v1801_v60  ;;  %v1995_v34 = vadd.f32 %v749_v18, %v1801_v60  ;;  %v863_v46 = vsel %vm226_vm1, %v841_v36, 0.0 }
 0x2b1   :  { %v772_v59 = vpop.xlane.xlu0 %771 }
 0x2b2   :  { %v785_v1 = vsel %vm226_vm1, %v1979_v17, 0.0  ;;  %v797_v47 = vsel %vm226_vm1, %v1995_v34, 0.0  ;;  %v810_v51 = vmul.f32 %v772_v59, %v1488_v53 }
 0x2b3   :  { %786 = vadd.xlane.f32.xlu2 %v785_v1 }
 0x2b4   :  { %v2048_v43 = vsub.f32 %v1934_v42, %v810_v51 }
 0x2b6   :  { %v842_v31 = vmul.f32 %v2048_v43, %v2048_v43 }
 0x2b7   :  { %v740_v39 = vpop.f32.mrf.mxu2  ;;  %v752_v12 = vpop.f32.mrf.mxu3 }
 0x2b8   :  { %v1987_v3 = vadd.f32 %v740_v39, %v1801_v60  ;;  %v2019_v40 = vadd.f32 %v752_v12, %v1801_v60 }
 0x2b9   :  { %v775_v8 = vpop.xlane.xlu1 %774 }
 0x2ba   :  { %v788_v13 = vsel %vm226_vm1, %v1987_v3, 0.0  ;;  %v811_v5 = vmul.f32 %v775_v8, %v1488_v53 }
 0x2bb   :  { %789 = vadd.xlane.f32.xlu0 %v788_v13  ;;  %795 = vadd.xlane.f32.xlu2 %v794_v21 }
 0x2bc   :  { %v2036_v55 = vsub.f32 %v1945_v0, %v811_v5 }
 0x2be   :  { %v843_v0 = vmul.f32 %v2036_v55, %v2036_v55 }
 0x2bf   :  { %v743_v10 = vpop.f32.mrf.mxu2  ;;  %v755_v7 = vpop.f32.mrf.mxu3 }
 0x2c0   :  { %v1999_v61 = vadd.f32 %v743_v10, %v1801_v60  ;;  %v2002_v32 = vadd.f32 %v755_v7, %v1801_v60  ;;  %v800_v60 = vsel %vm226_vm1, %v2019_v40, 0.0  ;;  %v869_v9 = vsel %vm226_vm1, %v843_v0, 0.0 }
 0x2c1   :  { %v778_v54 = vpop.xlane.xlu2 %777 }
 0x2c2   :  { %v791_v30 = vsel %vm226_vm1, %v1999_v61, 0.0  ;;  %v803_v50 = vsel %vm226_vm1, %v2002_v32, 0.0  ;;  %v812_v56 = vmul.f32 %v778_v54, %v1488_v53 }
 0x2c3   :  { %798 = vadd.xlane.f32.xlu0 %v797_v47  ;;  %792 = vadd.xlane.f32.xlu1 %v791_v30 }
 0x2c4   :  { %804 = vadd.xlane.f32.xlu2 %v803_v50  ;;  %v2051_v14 = vsub.f32 %v1954_v29, %v812_v56  ;;  %v866_v29 = vsel %vm226_vm1, %v842_v31, 0.0 }
 0x2c6   :  { %v844_v33 = vmul.f32 %v2051_v14, %v2051_v14 }
 0x2c8   :  { %v872_v42 = vsel %vm226_vm1, %v844_v33, 0.0 }
 0x2cb   :  { %855 = vadd.xlane.f32.xlu0 %v854_v57  ;;  %801 = vadd.xlane.f32.xlu1 %v800_v60 }
 0x2cc   :  { %861 = vadd.xlane.f32.xlu2 %v860_v38 }
 0x2d3   :  { %864 = vadd.xlane.f32.xlu0 %v863_v46  ;;  %858 = vadd.xlane.f32.xlu1 %v857_v11 }
 0x2d4   :  { %870 = vadd.xlane.f32.xlu2 %v869_v9  ;;  %v2124_v9 = vpop.f32.mrf.mxu1 }
 0x2db   :  { %873 = vadd.xlane.f32.xlu0 %v872_v42  ;;  %867 = vadd.xlane.f32.xlu1 %v866_v29 }
 0x314   :  { %v781_v25 = vpop.xlane.xlu0 %780 }
 0x315   :  { %v813_v58 = vmul.f32 %v781_v25, %v1488_v53 }
 0x317   :  { %v2064_v48 = vsub.f32 %v1967_v19, %v813_v58 }
 0x319   :  { %v845_v4 = vmul.f32 %v2064_v48, %v2064_v48 }
 0x31b   :  { %v875_v18 = vsel %vm226_vm1, %v845_v4, 0.0 }
 0x31c   :  { %876 = vadd.xlane.f32.xlu1 %v875_v18 }
 0x31e   :  { %v784_v1 = vpop.xlane.xlu1 %783 }
 0x31f   :  { %v814_v39 = vmul.f32 %v784_v1, %v1488_v53 }
 0x321   :  { %v2071_v12 = vsub.f32 %v1974_v20, %v814_v39 }
 0x323   :  { %v846_v13 = vmul.f32 %v2071_v12, %v2071_v12 }
 0x325   :  { %v878_v21 = vsel %vm226_vm1, %v846_v13, 0.0 }
 0x326   :  { %v787_v15 = vpop.xlane.xlu2 %786  ;;  %879 = vadd.xlane.f32.xlu2 %v878_v21 }
 0x327   :  { %v815_v19 = vmul.f32 %v787_v15, %v1488_v53 }
 0x329   :  { %v2078_v6 = vsub.f32 %v1979_v17, %v815_v19 }
 0x32b   :  { %v847_v23 = vmul.f32 %v2078_v6, %v2078_v6 }
 0x32d   :  { %v881_v20 = vsel %vm226_vm1, %v847_v23, 0.0  ;;  %v2140_v23 = vpop.f32.mrf.mxu1 }
 0x32e   :  { %v796_v10 = vpop.xlane.xlu2 %795  ;;  %882 = vadd.xlane.f32.xlu0 %v881_v20  ;;  %v790_v7 = vpop.xlane.xlu0 %789 }
 0x32f   :  { %v818_v47 = vmul.f32 %v796_v10, %v1488_v53  ;;  %v816_v30 = vmul.f32 %v790_v7, %v1488_v53 }
 0x331   :  { %v2088_v62 = vsub.f32 %v1984_v41, %v818_v47  ;;  %v2091_v17 = vsub.f32 %v1987_v3, %v816_v30 }
 0x333   :  { %v850_v35 = vmul.f32 %v2088_v62, %v2088_v62  ;;  %v848_v50 = vmul.f32 %v2091_v17, %v2091_v17 }
 0x335   :  { %v890_v8 = vsel %vm226_vm1, %v850_v35, 0.0  ;;  %v884_v2 = vsel %vm226_vm1, %v848_v50, 0.0 }
 0x336   :  { %891 = vadd.xlane.f32.xlu0 %v890_v8  ;;  %v793_v63 = vpop.xlane.xlu1 %792  ;;  %885 = vadd.xlane.f32.xlu1 %v884_v2  ;;  %v799_v41 = vpop.xlane.xlu0 %798 }
 0x337   :  { %v805_v5 = vpop.xlane.xlu2 %804  ;;  %v817_v3 = vmul.f32 %v793_v63, %v1488_v53  ;;  %v819_v27 = vmul.f32 %v799_v41, %v1488_v53 }
 0x338   :  { %v821_v57 = vmul.f32 %v805_v5, %v1488_v53 }
 0x339   :  { %v2105_v60 = vsub.f32 %v1999_v61, %v817_v3  ;;  %v2108_v59 = vsub.f32 %v1995_v34, %v819_v27  ;;  %v1316_v3 = vld [vmem:[%s2377_s4] sm:$0x7f] }
 0x33a   :  { %v2111_v54 = vsub.f32 %v2002_v32, %v821_v57  ;;  %v2152_v27 = vperm.slane %v1316_v3, 1 }
 0x33b   :  { %v849_v38 = vmul.f32 %v2105_v60, %v2105_v60  ;;  %v851_v51 = vmul.f32 %v2108_v59, %v2108_v59 }
 0x33c   :  { %v853_v56 = vmul.f32 %v2111_v54, %v2111_v54 }
 0x33d   :  { %v887_v36 = vsel %vm226_vm1, %v849_v38, 0.0  ;;  %v893_v61 = vsel %vm226_vm1, %v851_v51, 0.0 }
 0x33e   :  { %v899_v26 = vsel %vm226_vm1, %v853_v56, 0.0  ;;  %888 = vadd.xlane.f32.xlu2 %v887_v36  ;;  %v802_v34 = vpop.xlane.xlu1 %801  ;;  %894 = vadd.xlane.f32.xlu1 %v893_v61  ;;  %v856_v32 = vpop.xlane.xlu0 %855  ;;  %v2154_v56 = vperm.slane %v1316_v3, 5 }
 0x33f   :  { %v862_v0 = vpop.xlane.xlu2 %861  ;;  %900 = vadd.xlane.f32.xlu0 %v899_v26  ;;  %v820_v46 = vmul.f32 %v802_v34, %v1488_v53  ;;  %v902_v11 = vmul.f32 %v856_v32, %v1488_v53 }
 0x340   :  { %v904_v33 = vmul.f32 %v862_v0, %v1488_v53 }
 0x341   :  { %v2128_v31 = vsub.f32 %v2019_v40, %v820_v46  ;;  %v918_v42 = vadd.f32 1e-05, %v902_v11 }
 0x342   :  { %v920_v29 = vadd.f32 1e-05, %v904_v33  ;;  %v2168_v33 = vpop.f32.mrf.mxu1 }
 0x343   :  { %1279 = vrsqrt.f32 %v918_v42  ;;  %v852_v25 = vmul.f32 %v2128_v31, %v2128_v31  ;;  %vm940_vm10 = vweird.f32 %v918_v42 }
 0x344   :  { %1281 = vrsqrt.f32 %v920_v29  ;;  %vm960_vm11 = vweird.f32 %v920_v29 }
 0x345   :  { %v896_v58 = vsel %vm226_vm1, %v852_v25, 0.0  ;;  %v179_v25 = vadd.f32 %v2082_v22, %v2152_v27 }
 0x346   :  { %897 = vadd.xlane.f32.xlu2 %v896_v58  ;;  %v859_v4 = vpop.xlane.xlu1 %858  ;;  %v865_v18 = vpop.xlane.xlu0 %864 }
 0x347   :  { %v871_v1 = vpop.xlane.xlu2 %870  ;;  %v903_v39 = vmul.f32 %v859_v4, %v1488_v53  ;;  %v905_v13 = vmul.f32 %v865_v18, %v1488_v53 }
 0x348   :  { %v907_v40 = vmul.f32 %v871_v1, %v1488_v53 }
 0x349   :  { %v1280_v21 = vpop.eup %1279  ;;  %v2136_v15 = vadd.f32 1e-05, %v903_v39  ;;  %v2138_v19 = vadd.f32 1e-05, %v905_v13 }
 0x34a   :  { %v1282_v20 = vpop.eup %1281  ;;  %v935_v10 = vmul.f32 %v1280_v21, %v918_v42  ;;  %v2142_v7 = vadd.f32 1e-05, %v907_v40  ;;  %vm941_vm0 = vweird.f32 %v1280_v21 }
 0x34b   :  { %v955_v47 = vmul.f32 %v1282_v20, %v920_v29  ;;  %1283 = vrsqrt.f32 %v2136_v15  ;;  %vm961_vm9 = vweird.f32 %v1282_v20  ;;  %vm942_vm12 = vmor %vm940_vm10, %vm941_vm0  ;;  %v2175_v29 = vperm.slane %v1316_v3, 6 }
 0x34c   :  { %v936_v30 = vmul.f32 %v1280_v21, %v935_v10  ;;  %1285 = vrsqrt.f32 %v2142_v7  ;;  %vm962_vm13 = vmor %vm960_vm11, %vm961_vm9  ;;  %vm950_vm14 = vweird.f32 %v2136_v15  ;;  %vm990_vm4 = vweird.f32 %v2142_v7 }
 0x34d   :  { %v956_v35 = vmul.f32 %v1282_v20, %v955_v47  ;;  %1287 = vrsqrt.f32 %v2138_v19  ;;  %vm970_vm6 = vweird.f32 %v2138_v19 }
 0x34e   :  { %v937_v50 = vmul.f32 0.5, %v936_v30  ;;  %v868_v8 = vpop.xlane.xlu1 %867  ;;  %v874_v2 = vpop.xlane.xlu0 %873 }
 0x34f   :  { %v957_v63 = vmul.f32 0.5, %v956_v35  ;;  %v906_v41 = vmul.f32 %v868_v8, %v1488_v53  ;;  %v908_v5 = vmul.f32 %v874_v2, %v1488_v53 }
 0x350   :  { %v938_v57 = vsub.f32 1.5, %v937_v50 }
 0x351   :  { %v1284_v38 = vpop.eup %1283  ;;  %v958_v51 = vsub.f32 1.5, %v957_v63  ;;  %v2156_v36 = vadd.f32 1e-05, %v906_v41  ;;  %v2161_v32 = vadd.f32 1e-05, %v908_v5 }
 0x352   :  { %v2158_v61 = vpop.eup %1285  ;;  %v939_v26 = vmul.f32 %v1280_v21, %v938_v57  ;;  %v945_v34 = vmul.f32 %v1284_v38, %v2136_v15  ;;  %vm951_vm15 = vweird.f32 %v1284_v38 }
 0x353   :  { %v2163_v0 = vpop.eup %1287  ;;  %v959_v46 = vmul.f32 %v1282_v20, %v958_v51  ;;  %v985_v11 = vmul.f32 %v2158_v61, %v2142_v7  ;;  %1289 = vrsqrt.f32 %v2156_v36  ;;  %vm991_vm2 = vweird.f32 %v2158_v61  ;;  %vm952_vm5 = vmor %vm950_vm14, %vm951_vm15 }
 0x354   :  { %v943_v42 = vsel %vm942_vm12, %v1280_v21, %v939_v26  ;;  %v946_v58 = vmul.f32 %v1284_v38, %v945_v34  ;;  %v965_v4 = vmul.f32 %v2163_v0, %v2138_v19  ;;  %1291 = vrsqrt.f32 %v2161_v32  ;;  %vm992_vm7 = vmor %vm990_vm4, %vm991_vm2  ;;  %v193_v19 = vpop.f32.mrf.mxu1 }
 0x355   :  { %v963_v18 = vsel %vm962_vm13, %v1282_v20, %v959_v46  ;;  %v1095_v1 = vmul.f32 %v2154_v56, %v943_v42  ;;  %v986_v39 = vmul.f32 %v2158_v61, %v985_v11  ;;  %v185_v20 = vadd.f32 %v2124_v9, %v2152_v27 }
 0x356   :  { %v947_v13 = vmul.f32 0.5, %v946_v58  ;;  %v966_v40 = vmul.f32 %v2163_v0, %v965_v4  ;;  %v1097_v10 = vmul.f32 %v2154_v56, %v963_v18  ;;  %vm971_vm3 = vweird.f32 %v2163_v0 }
 0x357   :  { %v1111_v22 = vmul.f32 %v1095_v1, %v2005_v45  ;;  %v987_v21 = vmul.f32 0.5, %v986_v39  ;;  %vm972_vm8 = vmor %vm970_vm6, %vm971_vm3  ;;  %vm980_vm9 = vweird.f32 %v2156_v36  ;;  %vm1000_vm12 = vweird.f32 %v2161_v32 }
 0x358   :  { %v948_v47 = vsub.f32 1.5, %v947_v13  ;;  %v967_v30 = vmul.f32 0.5, %v966_v40  ;;  %v1113_v35 = vmul.f32 %v1097_v10, %v2012_v24  ;;  %v188_v40 = vadd.f32 %v2140_v23, %v2152_v27 }
 0x359   :  { %v1290_v50 = vpop.eup %1289  ;;  %v1128_v8 = vadd.f32 %v2175_v29, %v1111_v22  ;;  %v988_v2 = vsub.f32 1.5, %v987_v21 }
 0x35a   :  { %v949_v45 = vmul.f32 %v1284_v38, %v948_v47  ;;  %v968_v63 = vsub.f32 1.5, %v967_v30  ;;  %v1130_v41 = vadd.f32 %v2175_v29, %v1113_v35  ;;  %v975_v5 = vmul.f32 %v1290_v50, %v2156_v36  ;;  %v1292_v24 = vpop.eup %1291 }
 0x35b   :  { %v1144_v9 = vadd.f32 %v1128_v8, %v179_v25  ;;  %v989_v3 = vmul.f32 %v2158_v61, %v988_v2  ;;  %v995_v15 = vmul.f32 %v1292_v24, %v2161_v32  ;;  %vm981_vm0 = vweird.f32 %v1290_v50 }
 0x35c   :  { %v953_v57 = vsel %vm952_vm5, %v1284_v38, %v949_v45  ;;  %v969_v51 = vmul.f32 %v2163_v0, %v968_v63  ;;  %v1146_v26 = vadd.f32 %v1130_v41, %v185_v20  ;;  %v976_v34 = vmul.f32 %v1290_v50, %v975_v5  ;;  %vm982_vm10 = vmor %vm980_vm9, %vm981_vm0 }
 0x35d   :  { %1160 = vst.msk [vmem:[%s2380_s5] sm:$0xff] %vm226_vm1, %v1144_v9  ;;  %v993_v7 = vsel %vm992_vm7, %v2158_v61, %v989_v3  ;;  %v1096_v46 = vmul.f32 %v2154_v56, %v953_v57  ;;  %v182_v61 = vadd.f32 %v2099_v16, %v2152_v27  ;;  %v996_v58 = vmul.f32 %v1292_v24, %v995_v15 }
 0x35e   :  { %v973_v38 = vsel %vm972_vm8, %v2163_v0, %v969_v51  ;;  %1162 = vst.msk [vmem:[%s2380_s5 + $0x10] sm:$0xff] %vm226_vm1, %v1146_v26  ;;  %v977_v11 = vmul.f32 0.5, %v976_v34  ;;  %v1100_v25 = vmul.f32 %v2154_v56, %v993_v7  ;;  %v194_v0 = vadd.f32 %v193_v19, %v2152_v27 }
 0x35f   :  { %v1112_v42 = vmul.f32 %v1096_v46, %v2027_v49  ;;  %v1098_v4 = vmul.f32 %v2154_v56, %v973_v38  ;;  %v997_v13 = vmul.f32 0.5, %v996_v58  ;;  %vm1001_vm11 = vweird.f32 %v1292_v24 }
 0x360   :  { %v978_v18 = vsub.f32 1.5, %v977_v11  ;;  %v1116_v1 = vmul.f32 %v1100_v25, %v2036_v55  ;;  %vm1002_vm13 = vmor %vm1000_vm12, %vm1001_vm11  ;;  %v191_v35 = vadd.f32 %v2168_v33, %v2152_v27 }
 0x361   :  { %v1129_v39 = vadd.f32 %v2175_v29, %v1112_v42  ;;  %v1114_v10 = vmul.f32 %v1098_v4, %v2030_v28  ;;  %v998_v21 = vsub.f32 1.5, %v997_v13 }
 0x362   :  { %v979_v16 = vmul.f32 %v1290_v50, %v978_v18  ;;  %v1133_v49 = vadd.f32 %v2175_v29, %v1116_v1 }
 0x363   :  { %v1145_v22 = vadd.f32 %v1129_v39, %v182_v61  ;;  %v1131_v20 = vadd.f32 %v2175_v29, %v1114_v10  ;;  %v999_v23 = vmul.f32 %v1292_v24, %v998_v21 }
 0x364   :  { %v983_v55 = vsel %vm982_vm10, %v1290_v50, %v979_v16  ;;  %v1149_v47 = vadd.f32 %v1133_v49, %v194_v0  ;;  %v196_v50 = vpop.f32.mrf.mxu1 }
 0x365   :  { %1161 = vst.msk [vmem:[%s2380_s5 + $0x8] sm:$0xff] %vm226_vm1, %v1145_v22  ;;  %v1147_v28 = vadd.f32 %v1131_v20, %v188_v40  ;;  %v1099_v36 = vmul.f32 %v2154_v56, %v983_v55  ;;  %v1003_v30 = vsel %vm1002_vm13, %v1292_v24, %v999_v23  ;;  %v197_v45 = vadd.f32 %v196_v50, %v2152_v27 }
 0x366   :  { %1165 = vst.msk [vmem:[%s2380_s5 + $0x28] sm:$0xff] %vm226_vm1, %v1149_v47  ;;  %v1101_v8 = vmul.f32 %v2154_v56, %v1003_v30 }
 0x367   :  { %1163 = vst.msk [vmem:[%s2380_s5 + $0x18] sm:$0xff] %vm226_vm1, %v1147_v28  ;;  %v1115_v32 = vmul.f32 %v1099_v36, %v2048_v43 }
 0x368   :  { %v1117_v63 = vmul.f32 %v1101_v8, %v2051_v14 }
 0x369   :  { %v1132_v2 = vadd.f32 %v2175_v29, %v1115_v32 }
 0x36a   :  { %v1134_v5 = vadd.f32 %v2175_v29, %v1117_v63 }
 0x36b   :  { %v1148_v41 = vadd.f32 %v1132_v2, %v191_v35 }
 0x36c   :  { %v1150_v33 = vadd.f32 %v1134_v5, %v197_v45  ;;  %v199_v43 = vpop.f32.mrf.mxu1 }
 0x36d   :  { %1164 = vst.msk [vmem:[%s2380_s5 + $0x20] sm:$0xff] %vm226_vm1, %v1148_v41  ;;  %v200_v39 = vadd.f32 %v199_v43, %v2152_v27 }
 0x36e   :  { %1166 = vst.msk [vmem:[%s2380_s5 + $0x30] sm:$0xff] %vm226_vm1, %v1150_v33 }
 0x374   :  { %v202_v14 = vpop.f32.mrf.mxu1 }
 0x375   :  { %v203_v63 = vadd.f32 %v202_v14, %v2152_v27 }
 0x37c   :  { %v2259_v11 = vpop.f32.mrf.mxu1 }
 0x384   :  { %v2268_v47 = vpop.f32.mrf.mxu1 }
 0x38f   :  { %v877_v9 = vpop.xlane.xlu1 %876 }
 0x390   :  { %v909_v3 = vmul.f32 %v877_v9, %v1488_v53 }
 0x392   :  { %v925_v24 = vadd.f32 1e-05, %v909_v3 }
 0x394   :  { %1293 = vrsqrt.f32 %v925_v24  ;;  %vm1010_vm15 = vweird.f32 %v925_v24 }
 0x399   :  { %v880_v51 = vpop.xlane.xlu2 %879 }
 0x39a   :  { %v1294_v57 = vpop.eup %1293  ;;  %v910_v34 = vmul.f32 %v880_v51, %v1488_v53 }
 0x39b   :  { %v1005_v26 = vmul.f32 %v1294_v57, %v925_v24  ;;  %vm1011_vm14 = vweird.f32 %v1294_v57 }
 0x39c   :  { %v926_v46 = vadd.f32 1e-05, %v910_v34  ;;  %vm1012_vm2 = vmor %vm1010_vm15, %vm1011_vm14 }
 0x39d   :  { %v1006_v7 = vmul.f32 %v1294_v57, %v1005_v26 }
 0x39e   :  { %1295 = vrsqrt.f32 %v926_v46  ;;  %vm1020_vm4 = vweird.f32 %v926_v46 }
 0x39f   :  { %v1007_v15 = vmul.f32 0.5, %v1006_v7 }
 0x3a1   :  { %v1008_v19 = vsub.f32 1.5, %v1007_v15  ;;  %v883_v38 = vpop.xlane.xlu0 %882 }
 0x3a2   :  { %v911_v61 = vmul.f32 %v883_v38, %v1488_v53 }
 0x3a3   :  { %v1009_v25 = vmul.f32 %v1294_v57, %v1008_v19 }
 0x3a4   :  { %v1296_v42 = vpop.eup %1295  ;;  %v927_v4 = vadd.f32 1e-05, %v911_v61 }
 0x3a5   :  { %v1013_v58 = vsel %vm1012_vm2, %v1294_v57, %v1009_v25  ;;  %v1015_v18 = vmul.f32 %v1296_v42, %v926_v46  ;;  %vm1021_vm3 = vweird.f32 %v1296_v42  ;;  %v2290_v46 = vpop.f32.mrf.mxu1 }
 0x3a6   :  { %v1102_v0 = vmul.f32 %v2154_v56, %v1013_v58  ;;  %1297 = vrsqrt.f32 %v927_v4  ;;  %vm1022_vm5 = vmor %vm1020_vm4, %vm1021_vm3  ;;  %vm1030_vm7 = vweird.f32 %v927_v4 }
 0x3a7   :  { %v1016_v1 = vmul.f32 %v1296_v42, %v1015_v18 }
 0x3a8   :  { %v1118_v13 = vmul.f32 %v1102_v0, %v2064_v48  ;;  %v206_v0 = vadd.f32 %v2259_v11, %v2152_v27 }
 0x3a9   :  { %v1017_v40 = vmul.f32 0.5, %v1016_v1  ;;  %v886_v16 = vpop.xlane.xlu1 %885  ;;  %v892_v49 = vpop.xlane.xlu0 %891 }
 0x3aa   :  { %v1135_v10 = vadd.f32 %v2175_v29, %v1118_v13  ;;  %v912_v22 = vmul.f32 %v886_v16, %v1488_v53  ;;  %v914_v21 = vmul.f32 %v892_v49, %v1488_v53 }
 0x3ab   :  { %v1018_v20 = vsub.f32 1.5, %v1017_v40 }
 0x3ac   :  { %v1151_v55 = vadd.f32 %v1135_v10, %v200_v39  ;;  %v1298_v23 = vpop.eup %1297  ;;  %v928_v28 = vadd.f32 1e-05, %v912_v22  ;;  %v2270_v36 = vadd.f32 1e-05, %v914_v21 }
 0x3ad   :  { %v1019_v30 = vmul.f32 %v1296_v42, %v1018_v20  ;;  %v1025_v48 = vmul.f32 %v1298_v23, %v927_v4  ;;  %vm1031_vm6 = vweird.f32 %v1298_v23 }
 0x3ae   :  { %1167 = vst.msk [vmem:[%s2380_s5 + $0x38] sm:$0xff] %vm226_vm1, %v1151_v55  ;;  %1299 = vrsqrt.f32 %v928_v28  ;;  %vm1032_vm8 = vmor %vm1030_vm7, %vm1031_vm6  ;;  %vm1040_vm10 = vweird.f32 %v928_v28  ;;  %vm1060_vm12 = vweird.f32 %v2270_v36 }
 0x3af   :  { %v1023_v35 = vsel %vm1022_vm5, %v1296_v42, %v1019_v30  ;;  %v1026_v32 = vmul.f32 %v1298_v23, %v1025_v48  ;;  %1301 = vrsqrt.f32 %v2270_v36 }
 0x3b0   :  { %v1103_v50 = vmul.f32 %v2154_v56, %v1023_v35  ;;  %v214_v35 = vpop.f32.mrf.mxu1 }
 0x3b1   :  { %v1027_v8 = vmul.f32 0.5, %v1026_v32  ;;  %v889_v2 = vpop.xlane.xlu2 %888  ;;  %v895_v45 = vpop.xlane.xlu1 %894 }
 0x3b2   :  { %v1119_v41 = vmul.f32 %v1103_v50, %v2071_v12  ;;  %v913_v5 = vmul.f32 %v889_v2, %v1488_v53  ;;  %v915_v33 = vmul.f32 %v895_v45, %v1488_v53  ;;  %v901_v43 = vpop.xlane.xlu0 %900 }
 0x3b3   :  { %v1028_v9 = vsub.f32 1.5, %v1027_v8  ;;  %v917_v3 = vmul.f32 %v901_v43, %v1488_v53 }
 0x3b4   :  { %v1300_v24 = vpop.eup %1299  ;;  %v1136_v57 = vadd.f32 %v2175_v29, %v1119_v41  ;;  %v2284_v51 = vadd.f32 1e-05, %v913_v5  ;;  %v2286_v26 = vadd.f32 1e-05, %v915_v33  ;;  %v215_v5 = vadd.f32 %v214_v35, %v2152_v27 }
 0x3b5   :  { %v1302_v34 = vpop.eup %1301  ;;  %v1029_v14 = vmul.f32 %v1298_v23, %v1028_v9  ;;  %v1035_v12 = vmul.f32 %v1300_v24, %v928_v28  ;;  %v2288_v7 = vadd.f32 1e-05, %v917_v3  ;;  %vm1041_vm0 = vweird.f32 %v1300_v24 }
 0x3b6   :  { %v1152_v15 = vadd.f32 %v1136_v57, %v203_v63  ;;  %v1055_v19 = vmul.f32 %v1302_v34, %v2270_v36  ;;  %1303 = vrsqrt.f32 %v2284_v51  ;;  %vm1061_vm9 = vweird.f32 %v1302_v34  ;;  %vm1042_vm11 = vmor %vm1040_vm10, %vm1041_vm0 }
 0x3b7   :  { %v1033_v38 = vsel %vm1032_vm8, %v1298_v23, %v1029_v14  ;;  %v1036_v25 = vmul.f32 %v1300_v24, %v1035_v12  ;;  %1305 = vrsqrt.f32 %v2286_v26  ;;  %vm1062_vm13 = vmor %vm1060_vm12, %vm1061_vm9  ;;  %v209_v63 = vadd.f32 %v2268_v47, %v2152_v27 }
 0x3b8   :  { %1168 = vst.msk [vmem:[%s2380_s5 + $0x40] sm:$0xff] %vm226_vm1, %v1152_v15  ;;  %v1056_v61 = vmul.f32 %v1302_v34, %v1055_v19  ;;  %v1104_v42 = vmul.f32 %v2154_v56, %v1033_v38  ;;  %1307 = vrsqrt.f32 %v2288_v7  ;;  %vm1050_vm15 = vweird.f32 %v2284_v51 }
 0x3b9   :  { %v1037_v58 = vmul.f32 0.5, %v1036_v25  ;;  %v898_v4 = vpop.xlane.xlu2 %897  ;;  %vm1070_vm5 = vweird.f32 %v2286_v26  ;;  %vm1090_vm7 = vweird.f32 %v2288_v7 }
 0x3ba   :  { %v1057_v18 = vmul.f32 0.5, %v1056_v61  ;;  %v1120_v1 = vmul.f32 %v1104_v42, %v2078_v6  ;;  %v916_v39 = vmul.f32 %v898_v4, %v1488_v53 }
 0x3bb   :  { %v1038_v13 = vsub.f32 1.5, %v1037_v58 }
 0x3bc   :  { %v1304_v40 = vpop.eup %1303  ;;  %v1058_v10 = vsub.f32 1.5, %v1057_v18  ;;  %v1137_v16 = vadd.f32 %v2175_v29, %v1120_v1  ;;  %v2306_v49 = vadd.f32 1e-05, %v916_v39 }
 0x3bd   :  { %v1306_v22 = vpop.eup %1305  ;;  %v1039_v21 = vmul.f32 %v1300_v24, %v1038_v13  ;;  %v1045_v20 = vmul.f32 %v1304_v40, %v2284_v51  ;;  %vm1051_vm14 = vweird.f32 %v1304_v40  ;;  %v218_v13 = vadd.f32 %v1962_v44, %v2152_v27 }
 0x3be   :  { %v1308_v55 = vpop.eup %1307  ;;  %v1059_v11 = vmul.f32 %v1302_v34, %v1058_v10  ;;  %v1153_v53 = vadd.f32 %v1137_v16, %v206_v0  ;;  %v1065_v6 = vmul.f32 %v1306_v22, %v2286_v26  ;;  %1309 = vrsqrt.f32 %v2306_v49  ;;  %vm1052_vm4 = vmor %vm1050_vm15, %vm1051_vm14 }
 0x3bf   :  { %v1043_v23 = vsel %vm1042_vm11, %v1300_v24, %v1039_v21  ;;  %v1046_v30 = vmul.f32 %v1304_v40, %v1045_v20  ;;  %v1085_v48 = vmul.f32 %v1308_v55, %v2288_v7  ;;  %vm1071_vm2 = vweird.f32 %v1306_v22 }
 0x3c0   :  { %v1063_v32 = vsel %vm1062_vm13, %v1302_v34, %v1059_v11  ;;  %1169 = vst.msk [vmem:[%s2380_s5 + $0x48] sm:$0xff] %vm226_vm1, %v1153_v53  ;;  %v1066_v28 = vmul.f32 %v1306_v22, %v1065_v6  ;;  %v1105_v50 = vmul.f32 %v2154_v56, %v1043_v23  ;;  %vm1091_vm3 = vweird.f32 %v1308_v55  ;;  %vm1072_vm6 = vmor %vm1070_vm5, %vm1071_vm2 }
 0x3c1   :  { %v1047_v36 = vmul.f32 0.5, %v1046_v30  ;;  %v1086_v8 = vmul.f32 %v1308_v55, %v1085_v48  ;;  %v1107_v2 = vmul.f32 %v2154_v56, %v1063_v32  ;;  %vm1092_vm8 = vmor %vm1090_vm7, %vm1091_vm3  ;;  %v212_v7 = vadd.f32 %v2290_v46, %v2152_v27 }
 0x3c2   :  { %v1067_v45 = vmul.f32 0.5, %v1066_v28  ;;  %v1121_v41 = vmul.f32 %v1105_v50, %v2091_v17  ;;  %vm1080_vm9 = vweird.f32 %v2306_v49  ;;  %v221_v21 = vadd.f32 %v1964_v37, %v2152_v27 }
 0x3c3   :  { %v1048_v33 = vsub.f32 1.5, %v1047_v36  ;;  %v1087_v43 = vmul.f32 0.5, %v1086_v8  ;;  %v1123_v9 = vmul.f32 %v1107_v2, %v2088_v62 }
 0x3c4   :  { %v1068_v3 = vsub.f32 1.5, %v1067_v45  ;;  %v1138_v24 = vadd.f32 %v2175_v29, %v1121_v41  ;;  %v1310_v14 = vpop.eup %1309 }
 0x3c5   :  { %v1049_v57 = vmul.f32 %v1304_v40, %v1048_v33  ;;  %v1088_v34 = vsub.f32 1.5, %v1087_v43  ;;  %v1140_v47 = vadd.f32 %v2175_v29, %v1123_v9  ;;  %v1075_v51 = vmul.f32 %v1310_v14, %v2306_v49 }
 0x3c6   :  { %v1069_v17 = vmul.f32 %v1306_v22, %v1068_v3  ;;  %v1154_v12 = vadd.f32 %v1138_v24, %v209_v63  ;;  %vm1081_vm0 = vweird.f32 %v1310_v14 }
 0x3c7   :  { %v1053_v15 = vsel %vm1052_vm4, %v1304_v40, %v1049_v57  ;;  %v1089_v62 = vmul.f32 %v1308_v55, %v1088_v34  ;;  %v1156_v25 = vadd.f32 %v1140_v47, %v215_v5  ;;  %v1076_v42 = vmul.f32 %v1310_v14, %v1075_v51  ;;  %vm1082_vm10 = vmor %vm1080_vm9, %vm1081_vm0 }
 0x3c8   :  { %v1073_v19 = vsel %vm1072_vm6, %v1306_v22, %v1069_v17  ;;  %1170 = vst.msk [vmem:[%s2380_s5 + $0x50] sm:$0xff] %vm226_vm1, %v1154_v12  ;;  %v1106_v38 = vmul.f32 %v2154_v56, %v1053_v15 }
 0x3c9   :  { %v1108_v26 = vmul.f32 %v2154_v56, %v1073_v19  ;;  %v1093_v61 = vsel %vm1092_vm8, %v1308_v55, %v1089_v62  ;;  %1172 = vst.msk [vmem:[%s2380_s5 + $0x60] sm:$0xff] %vm226_vm1, %v1156_v25  ;;  %v1077_v0 = vmul.f32 0.5, %v1076_v42 }
 0x3ca   :  { %v1110_v58 = vmul.f32 %v2154_v56, %v1093_v61  ;;  %v1122_v4 = vmul.f32 %v1106_v38, %v2105_v60  ;;  %v224_v60 = vadd.f32 %v1969_v52, %v2152_v27 }
 0x3cb   :  { %v1124_v18 = vmul.f32 %v1108_v26, %v2108_v59  ;;  %v1078_v46 = vsub.f32 1.5, %v1077_v0 }
 0x3cc   :  { %v1126_v1 = vmul.f32 %v1110_v58, %v2111_v54  ;;  %v1139_v39 = vadd.f32 %v2175_v29, %v1122_v4 }
 0x3cd   :  { %v1141_v40 = vadd.f32 %v2175_v29, %v1124_v18  ;;  %v1079_v59 = vmul.f32 %v1310_v14, %v1078_v46 }
 0x3ce   :  { %v1143_v10 = vadd.f32 %v2175_v29, %v1126_v1  ;;  %v1155_v16 = vadd.f32 %v1139_v39, %v212_v7 }
 0x3cf   :  { %v1157_v22 = vadd.f32 %v1141_v40, %v218_v13  ;;  %v1083_v44 = vsel %vm1082_vm10, %v1310_v14, %v1079_v59 }
 0x3d0   :  { %v1159_v54 = vadd.f32 %v1143_v10, %v224_v60  ;;  %1171 = vst.msk [vmem:[%s2380_s5 + $0x58] sm:$0xff] %vm226_vm1, %v1155_v16  ;;  %v1109_v52 = vmul.f32 %v2154_v56, %v1083_v44 }
 0x3d1   :  { %1173 = vst.msk [vmem:[%s2380_s5 + $0x68] sm:$0xff] %vm226_vm1, %v1157_v22 }
 0x3d2   :  { %1175 = vst.msk [vmem:[%s2380_s5 + $0x78] sm:$0xff] %vm226_vm1, %v1159_v54  ;;  %v1125_v49 = vmul.f32 %v1109_v52, %v2128_v31 }
 0x3d4   :  { %v1142_v20 = vadd.f32 %v2175_v29, %v1125_v49 }
 0x3d6   :  { %v1158_v55 = vadd.f32 %v1142_v20, %v221_v21 }
 0x3d8   :  { %1174 = vst.msk [vmem:[%s2380_s5 + $0x70] sm:$0xff] %vm226_vm1, %v1158_v55 }

</bundles_post_ra>
